<compile_context>
chip_gen: v5e
topology: v5e:2x2
jax: 0.10.0
libtpu: 0.0.40
codegen_flags: <defaults>
</compile_context>

<pallas_src>
import functools

import jax
import jax.numpy as jnp
from jax.experimental import pallas as pl
from jax.experimental.pallas import tpu as pltpu

KSIZE = 7
PAD = (KSIZE - 1) // 2  # 3


def _round_up(x, m):
    return ((x + m - 1) // m) * m


def _spatial_gate_kernel(w_ref, bn_ref, mask_ref, x_ref, o_ref, pad_ref, *,
                         H, W, PADF):
    # w_ref   : SMEM f32[2*7*7]          flattened conv weight (in-channel, kh, kw)
    # bn_ref  : SMEM f32[2]              [bn_scale, bn_bias] (folded BatchNorm)
    # mask_ref: VMEM f32[7, H*W]         column-validity masks, one per kw offset
    # x_ref   : VMEM (Nt, C, H*W)
    # o_ref   : VMEM (Nt, C, H*W)
    # pad_ref : VMEM scratch (2, Nt, H*W + 2*PADF)  flat zero-halo conv input
    HW = H * W
    Nt = x_ref.shape[0]
    L = HW + 2 * PADF

    # ---- hoist all scalar reads out of the FMA chain (98 weights + folded BN) ----
    wv = [w_ref[i] for i in range(2 * KSIZE * KSIZE)]
    bn_s = bn_ref[0]
    bn_b = bn_ref[1]

    # ---- ChannelPool: max & mean over the channel axis (lane-dense flat layout) ----
    x = x_ref[...].astype(jnp.float32)                 # (Nt, C, HW)
    cmax = jnp.max(x, axis=1)                          # (Nt, HW)
    cmean = jnp.mean(x, axis=1)                        # (Nt, HW)

    # ---- fill the flat conv scratch: zero only the halo (interior is always
    #      fully overwritten; no reliance on state from previous grid steps) ----
    zero_halo = jnp.zeros((2, Nt, PADF), jnp.float32)
    pad_ref[:, :, 0:PADF] = zero_halo
    pad_ref[:, :, PADF + HW:L] = zero_halo
    pad_ref[0, :, PADF:PADF + HW] = cmax               # 128-aligned interior writes
    pad_ref[1, :, PADF:PADF + HW] = cmean

    # ---- 7x7 conv (2 -> 1 channels) on the flattened H*W axis ----
    # tap (dh, dw) == lane shift of dh*W + dw; rows outside [0,H) hit the zero halo,
    # columns outside [0,W) are zeroed by the per-dw mask applied to the dh-sum.
    acc = jnp.zeros((Nt, HW), jnp.float32)
    for j in range(KSIZE):                             # kw index, dw = j - PAD
        dw = j - PAD
        mj = mask_ref[j:j + 1, :]                      # (1, HW) 0/1 column mask
        for c in range(2):
            inner = jnp.zeros((Nt, HW), jnp.float32)
            for kh in range(KSIZE):
                dh = kh - PAD
                s = PADF + dh * W + dw
                tap = pad_ref[c, :, s:s + HW]          # (Nt, HW)
                inner = inner + wv[c * KSIZE * KSIZE + kh * KSIZE + j] * tap
            acc = acc + mj * inner

    # ---- BatchNorm (inference, folded) + sigmoid gate ----
    gate = jax.nn.sigmoid(acc * bn_s + bn_b)           # (Nt, HW)

    # ---- gating: re-read x (short live range) and store lane-dense ----
    xg = x_ref[...]
    o_ref[...] = (xg * gate.astype(xg.dtype)[:, None, :]).astype(o_ref.dtype)


def _pick_block_n(N, C, HW, itemsize, budget_bytes=1 << 20):
    """Largest divisor of N whose block fits the budget, keeping >= 2 grid steps."""
    per_n = max(1, C * HW * itemsize)
    best = 1
    for nt in range(1, N + 1):
        if N % nt:
            continue
        if nt * per_n > budget_bytes:
            continue
        if N // nt < 2 and nt != 1:
            continue  # keep at least 2 parallel grid steps (v7x has 2 TensorCores)
        best = nt
    return best


def spatial_gate(x, conv_w, bn_gamma, bn_beta, bn_mean, bn_var, eps=1e-5,
                 block_n=None):
    """x: (N, C, H, W); conv_w: (1, 2, 7, 7). Returns x * sigmoid(BN(conv(pool(x))))."""
    N, C, H, W = x.shape
    HW = H * W
    PADF = _round_up(PAD * W + PAD, 128)               # lane-aligned halo >= 3*W + 3

    if block_n is None:
        block_n = _pick_block_n(N, C, HW, x.dtype.itemsize)
    assert N % block_n == 0

    # Fold BatchNorm (inference) to scale/bias.
    bn_scale = bn_gamma / jnp.sqrt(bn_var + eps)                        # (1,)
    bn_bias = bn_beta - bn_mean * bn_scale                              # (1,)
    w_flat = conv_w.reshape(-1).astype(jnp.float32)                     # (98,)
    bn_flat = jnp.concatenate([bn_scale, bn_bias]).astype(jnp.float32)  # (2,)

    # Column-validity masks for the 7 kw offsets (built once on host side).
    col = jnp.arange(HW, dtype=jnp.int32) % W
    dws = jnp.arange(-PAD, PAD + 1, dtype=jnp.int32)
    masks = (((col[None, :] + dws[:, None]) >= 0)
             & ((col[None, :] + dws[:, None]) < W)).astype(jnp.float32)  # (7, HW)

    x_flat = x.reshape(N, C, HW)                       # contiguous, free reshape

    kernel = functools.partial(_spatial_gate_kernel, H=H, W=W, PADF=PADF)

    flops = int(N * HW * 2 * 2 * KSIZE * KSIZE + 4 * N * C * HW)
    bytes_accessed = int(2 * N * C * HW * x.dtype.itemsize
                         + masks.size * 4 + w_flat.size * 4)
    cost = pl.CostEstimate(flops=flops, transcendentals=int(N * HW),
                           bytes_accessed=bytes_accessed)

    out_flat = pl.pallas_call(
        kernel,
        out_shape=jax.ShapeDtypeStruct((N, C, HW), x.dtype),
        grid_spec=pltpu.PrefetchScalarGridSpec(
            num_scalar_prefetch=0,
            grid=(N // block_n,),
            in_specs=[
                pl.BlockSpec(memory_space=pltpu.MemorySpace.SMEM),     # conv weight
                pl.BlockSpec(memory_space=pltpu.MemorySpace.SMEM),     # folded BN
                pl.BlockSpec((KSIZE, HW), lambda n: (0, 0)),           # column masks
                pl.BlockSpec((block_n, C, HW), lambda n: (n, 0, 0)),   # x
            ],
            out_specs=pl.BlockSpec((block_n, C, HW), lambda n: (n, 0, 0)),
            scratch_shapes=[
                pltpu.VMEM((2, block_n, HW + 2 * PADF), jnp.float32),
            ],
        ),
        compiler_params=pltpu.CompilerParams(
            dimension_semantics=("parallel",),
        ),
        cost_estimate=cost,
    )(w_flat, bn_flat, masks, x_flat)

    return out_flat.reshape(N, C, H, W)


def _reference(x, conv_w, bn_gamma, bn_beta, bn_mean, bn_var, eps=1e-5):
    cmax = jnp.max(x, axis=1, keepdims=True)
    cmean = jnp.mean(x, axis=1, keepdims=True)
    xc = jnp.concatenate([cmax, cmean], axis=1)
    y = jax.lax.conv_general_dilated(
        xc, conv_w, window_strides=(1, 1), padding=[(PAD, PAD), (PAD, PAD)],
        dimension_numbers=("NCHW", "OIHW", "NCHW"),
        precision=jax.lax.Precision.HIGHEST)           # full-f32 reference conv
    bn_scale = bn_gamma / jnp.sqrt(bn_var + eps)
    bn_bias = bn_beta - bn_mean * bn_scale
    y = y * bn_scale[None, :, None, None] + bn_bias[None, :, None, None]
    return x * jax.nn.sigmoid(y)


if __name__ == "__main__":
    key = jax.random.PRNGKey(0)
    k_x, k_w = jax.random.split(key)

    N, C, H, W = 2, 4, 16, 16
    x = jax.random.normal(k_x, (N, C, H, W), dtype=jnp.float32)

    # Conv2d(2, 1, 7, padding=3, bias=False) weight, deterministic init.
    fan_in = 2 * KSIZE * KSIZE
    bound = 1.0 / (fan_in ** 0.5)
    conv_w = jax.random.uniform(k_w, (1, 2, KSIZE, KSIZE),
                                dtype=jnp.float32, minval=-bound, maxval=bound)

    # BatchNorm2d(1) default init (inference mode).
    bn_gamma = jnp.ones((1,), jnp.float32)
    bn_beta = jnp.zeros((1,), jnp.float32)
    bn_mean = jnp.zeros((1,), jnp.float32)
    bn_var = jnp.ones((1,), jnp.float32)

    out = spatial_gate(x, conv_w, bn_gamma, bn_beta, bn_mean, bn_var)
    out = jax.block_until_ready(out)

    ref = _reference(x, conv_w, bn_gamma, bn_beta, bn_mean, bn_var)
    assert out.shape == (N, C, H, W)
    assert jnp.allclose(out, ref, rtol=1e-4, atol=1e-4), "mismatch vs reference"

    print("KERNEL_OK")
</pallas_src>

<mosaic_0001>
module attributes {stable_mosaic.version = 11 : i64} {
  func.func @_spatial_gate_kernel(%arg0: i32, %arg1: memref<98xf32, #tpu.memory_space<smem>>, %arg2: memref<2xf32, #tpu.memory_space<smem>>, %arg3: memref<7x256xf32, #tpu.memory_space<vmem>>, %arg4: memref<1x4x256xf32, #tpu.memory_space<vmem>>, %arg5: memref<1x4x256xf32, #tpu.memory_space<vmem>>, %arg6: memref<2x1x512xf32, #tpu.memory_space<vmem>>) attributes {dimension_semantics = [#tpu.dimension_semantics<parallel>], iteration_bounds = array<i64: 2>, scalar_prefetch = 0 : i64, scratch_operands = 1 : i64, tpu.core_type = #tpu.core_type<tc>, window_params = [{transform_indices = @transform_0, window_bounds = array<i64: 98>}, {transform_indices = @transform_1, window_bounds = array<i64: 2>}, {pipeline_mode = #tpu.pipeline_mode<synchronous>, transform_indices = @transform_2, window_bounds = array<i64: 7, 256>}, {transform_indices = @transform_3, window_bounds = array<i64: 1, 4, 256>}, {transform_indices = @transform_4, window_bounds = array<i64: 1, 4, 256>}]} {
    %c0 = arith.constant 0 : index
    %0 = memref.load %arg1[%c0] : memref<98xf32, #tpu.memory_space<smem>>
    %c1 = arith.constant 1 : index
    %1 = memref.load %arg1[%c1] : memref<98xf32, #tpu.memory_space<smem>>
    %c2 = arith.constant 2 : index
    %2 = memref.load %arg1[%c2] : memref<98xf32, #tpu.memory_space<smem>>
    %c3 = arith.constant 3 : index
    %3 = memref.load %arg1[%c3] : memref<98xf32, #tpu.memory_space<smem>>
    %c4 = arith.constant 4 : index
    %4 = memref.load %arg1[%c4] : memref<98xf32, #tpu.memory_space<smem>>
    %c5 = arith.constant 5 : index
    %5 = memref.load %arg1[%c5] : memref<98xf32, #tpu.memory_space<smem>>
    %c6 = arith.constant 6 : index
    %6 = memref.load %arg1[%c6] : memref<98xf32, #tpu.memory_space<smem>>
    %c7 = arith.constant 7 : index
    %7 = memref.load %arg1[%c7] : memref<98xf32, #tpu.memory_space<smem>>
    %c8 = arith.constant 8 : index
    %8 = memref.load %arg1[%c8] : memref<98xf32, #tpu.memory_space<smem>>
    %c9 = arith.constant 9 : index
    %9 = memref.load %arg1[%c9] : memref<98xf32, #tpu.memory_space<smem>>
    %c10 = arith.constant 10 : index
    %10 = memref.load %arg1[%c10] : memref<98xf32, #tpu.memory_space<smem>>
    %c11 = arith.constant 11 : index
    %11 = memref.load %arg1[%c11] : memref<98xf32, #tpu.memory_space<smem>>
    %c12 = arith.constant 12 : index
    %12 = memref.load %arg1[%c12] : memref<98xf32, #tpu.memory_space<smem>>
    %c13 = arith.constant 13 : index
    %13 = memref.load %arg1[%c13] : memref<98xf32, #tpu.memory_space<smem>>
    %c14 = arith.constant 14 : index
    %14 = memref.load %arg1[%c14] : memref<98xf32, #tpu.memory_space<smem>>
    %c15 = arith.constant 15 : index
    %15 = memref.load %arg1[%c15] : memref<98xf32, #tpu.memory_space<smem>>
    %c16 = arith.constant 16 : index
    %16 = memref.load %arg1[%c16] : memref<98xf32, #tpu.memory_space<smem>>
    %c17 = arith.constant 17 : index
    %17 = memref.load %arg1[%c17] : memref<98xf32, #tpu.memory_space<smem>>
    %c18 = arith.constant 18 : index
    %18 = memref.load %arg1[%c18] : memref<98xf32, #tpu.memory_space<smem>>
    %c19 = arith.constant 19 : index
    %19 = memref.load %arg1[%c19] : memref<98xf32, #tpu.memory_space<smem>>
    %c20 = arith.constant 20 : index
    %20 = memref.load %arg1[%c20] : memref<98xf32, #tpu.memory_space<smem>>
    %c21 = arith.constant 21 : index
    %21 = memref.load %arg1[%c21] : memref<98xf32, #tpu.memory_space<smem>>
    %c22 = arith.constant 22 : index
    %22 = memref.load %arg1[%c22] : memref<98xf32, #tpu.memory_space<smem>>
    %c23 = arith.constant 23 : index
    %23 = memref.load %arg1[%c23] : memref<98xf32, #tpu.memory_space<smem>>
    %c24 = arith.constant 24 : index
    %24 = memref.load %arg1[%c24] : memref<98xf32, #tpu.memory_space<smem>>
    %c25 = arith.constant 25 : index
    %25 = memref.load %arg1[%c25] : memref<98xf32, #tpu.memory_space<smem>>
    %c26 = arith.constant 26 : index
    %26 = memref.load %arg1[%c26] : memref<98xf32, #tpu.memory_space<smem>>
    %c27 = arith.constant 27 : index
    %27 = memref.load %arg1[%c27] : memref<98xf32, #tpu.memory_space<smem>>
    %c28 = arith.constant 28 : index
    %28 = memref.load %arg1[%c28] : memref<98xf32, #tpu.memory_space<smem>>
    %c29 = arith.constant 29 : index
    %29 = memref.load %arg1[%c29] : memref<98xf32, #tpu.memory_space<smem>>
    %c30 = arith.constant 30 : index
    %30 = memref.load %arg1[%c30] : memref<98xf32, #tpu.memory_space<smem>>
    %c31 = arith.constant 31 : index
    %31 = memref.load %arg1[%c31] : memref<98xf32, #tpu.memory_space<smem>>
    %c32 = arith.constant 32 : index
    %32 = memref.load %arg1[%c32] : memref<98xf32, #tpu.memory_space<smem>>
    %c33 = arith.constant 33 : index
    %33 = memref.load %arg1[%c33] : memref<98xf32, #tpu.memory_space<smem>>
    %c34 = arith.constant 34 : index
    %34 = memref.load %arg1[%c34] : memref<98xf32, #tpu.memory_space<smem>>
    %c35 = arith.constant 35 : index
    %35 = memref.load %arg1[%c35] : memref<98xf32, #tpu.memory_space<smem>>
    %c36 = arith.constant 36 : index
    %36 = memref.load %arg1[%c36] : memref<98xf32, #tpu.memory_space<smem>>
    %c37 = arith.constant 37 : index
    %37 = memref.load %arg1[%c37] : memref<98xf32, #tpu.memory_space<smem>>
    %c38 = arith.constant 38 : index
    %38 = memref.load %arg1[%c38] : memref<98xf32, #tpu.memory_space<smem>>
    %c39 = arith.constant 39 : index
    %39 = memref.load %arg1[%c39] : memref<98xf32, #tpu.memory_space<smem>>
    %c40 = arith.constant 40 : index
    %40 = memref.load %arg1[%c40] : memref<98xf32, #tpu.memory_space<smem>>
    %c41 = arith.constant 41 : index
    %41 = memref.load %arg1[%c41] : memref<98xf32, #tpu.memory_space<smem>>
    %c42 = arith.constant 42 : index
    %42 = memref.load %arg1[%c42] : memref<98xf32, #tpu.memory_space<smem>>
    %c43 = arith.constant 43 : index
    %43 = memref.load %arg1[%c43] : memref<98xf32, #tpu.memory_space<smem>>
    %c44 = arith.constant 44 : index
    %44 = memref.load %arg1[%c44] : memref<98xf32, #tpu.memory_space<smem>>
    %c45 = arith.constant 45 : index
    %45 = memref.load %arg1[%c45] : memref<98xf32, #tpu.memory_space<smem>>
    %c46 = arith.constant 46 : index
    %46 = memref.load %arg1[%c46] : memref<98xf32, #tpu.memory_space<smem>>
    %c47 = arith.constant 47 : index
    %47 = memref.load %arg1[%c47] : memref<98xf32, #tpu.memory_space<smem>>
    %c48 = arith.constant 48 : index
    %48 = memref.load %arg1[%c48] : memref<98xf32, #tpu.memory_space<smem>>
    %c49 = arith.constant 49 : index
    %49 = memref.load %arg1[%c49] : memref<98xf32, #tpu.memory_space<smem>>
    %c50 = arith.constant 50 : index
    %50 = memref.load %arg1[%c50] : memref<98xf32, #tpu.memory_space<smem>>
    %c51 = arith.constant 51 : index
    %51 = memref.load %arg1[%c51] : memref<98xf32, #tpu.memory_space<smem>>
    %c52 = arith.constant 52 : index
    %52 = memref.load %arg1[%c52] : memref<98xf32, #tpu.memory_space<smem>>
    %c53 = arith.constant 53 : index
    %53 = memref.load %arg1[%c53] : memref<98xf32, #tpu.memory_space<smem>>
    %c54 = arith.constant 54 : index
    %54 = memref.load %arg1[%c54] : memref<98xf32, #tpu.memory_space<smem>>
    %c55 = arith.constant 55 : index
    %55 = memref.load %arg1[%c55] : memref<98xf32, #tpu.memory_space<smem>>
    %c56 = arith.constant 56 : index
    %56 = memref.load %arg1[%c56] : memref<98xf32, #tpu.memory_space<smem>>
    %c57 = arith.constant 57 : index
    %57 = memref.load %arg1[%c57] : memref<98xf32, #tpu.memory_space<smem>>
    %c58 = arith.constant 58 : index
    %58 = memref.load %arg1[%c58] : memref<98xf32, #tpu.memory_space<smem>>
    %c59 = arith.constant 59 : index
    %59 = memref.load %arg1[%c59] : memref<98xf32, #tpu.memory_space<smem>>
    %c60 = arith.constant 60 : index
    %60 = memref.load %arg1[%c60] : memref<98xf32, #tpu.memory_space<smem>>
    %c61 = arith.constant 61 : index
    %61 = memref.load %arg1[%c61] : memref<98xf32, #tpu.memory_space<smem>>
    %c62 = arith.constant 62 : index
    %62 = memref.load %arg1[%c62] : memref<98xf32, #tpu.memory_space<smem>>
    %c63 = arith.constant 63 : index
    %63 = memref.load %arg1[%c63] : memref<98xf32, #tpu.memory_space<smem>>
    %c64 = arith.constant 64 : index
    %64 = memref.load %arg1[%c64] : memref<98xf32, #tpu.memory_space<smem>>
    %c65 = arith.constant 65 : index
    %65 = memref.load %arg1[%c65] : memref<98xf32, #tpu.memory_space<smem>>
    %c66 = arith.constant 66 : index
    %66 = memref.load %arg1[%c66] : memref<98xf32, #tpu.memory_space<smem>>
    %c67 = arith.constant 67 : index
    %67 = memref.load %arg1[%c67] : memref<98xf32, #tpu.memory_space<smem>>
    %c68 = arith.constant 68 : index
    %68 = memref.load %arg1[%c68] : memref<98xf32, #tpu.memory_space<smem>>
    %c69 = arith.constant 69 : index
    %69 = memref.load %arg1[%c69] : memref<98xf32, #tpu.memory_space<smem>>
    %c70 = arith.constant 70 : index
    %70 = memref.load %arg1[%c70] : memref<98xf32, #tpu.memory_space<smem>>
    %c71 = arith.constant 71 : index
    %71 = memref.load %arg1[%c71] : memref<98xf32, #tpu.memory_space<smem>>
    %c72 = arith.constant 72 : index
    %72 = memref.load %arg1[%c72] : memref<98xf32, #tpu.memory_space<smem>>
    %c73 = arith.constant 73 : index
    %73 = memref.load %arg1[%c73] : memref<98xf32, #tpu.memory_space<smem>>
    %c74 = arith.constant 74 : index
    %74 = memref.load %arg1[%c74] : memref<98xf32, #tpu.memory_space<smem>>
    %c75 = arith.constant 75 : index
    %75 = memref.load %arg1[%c75] : memref<98xf32, #tpu.memory_space<smem>>
    %c76 = arith.constant 76 : index
    %76 = memref.load %arg1[%c76] : memref<98xf32, #tpu.memory_space<smem>>
    %c77 = arith.constant 77 : index
    %77 = memref.load %arg1[%c77] : memref<98xf32, #tpu.memory_space<smem>>
    %c78 = arith.constant 78 : index
    %78 = memref.load %arg1[%c78] : memref<98xf32, #tpu.memory_space<smem>>
    %c79 = arith.constant 79 : index
    %79 = memref.load %arg1[%c79] : memref<98xf32, #tpu.memory_space<smem>>
    %c80 = arith.constant 80 : index
    %80 = memref.load %arg1[%c80] : memref<98xf32, #tpu.memory_space<smem>>
    %c81 = arith.constant 81 : index
    %81 = memref.load %arg1[%c81] : memref<98xf32, #tpu.memory_space<smem>>
    %c82 = arith.constant 82 : index
    %82 = memref.load %arg1[%c82] : memref<98xf32, #tpu.memory_space<smem>>
    %c83 = arith.constant 83 : index
    %83 = memref.load %arg1[%c83] : memref<98xf32, #tpu.memory_space<smem>>
    %c84 = arith.constant 84 : index
    %84 = memref.load %arg1[%c84] : memref<98xf32, #tpu.memory_space<smem>>
    %c85 = arith.constant 85 : index
    %85 = memref.load %arg1[%c85] : memref<98xf32, #tpu.memory_space<smem>>
    %c86 = arith.constant 86 : index
    %86 = memref.load %arg1[%c86] : memref<98xf32, #tpu.memory_space<smem>>
    %c87 = arith.constant 87 : index
    %87 = memref.load %arg1[%c87] : memref<98xf32, #tpu.memory_space<smem>>
    %c88 = arith.constant 88 : index
    %88 = memref.load %arg1[%c88] : memref<98xf32, #tpu.memory_space<smem>>
    %c89 = arith.constant 89 : index
    %89 = memref.load %arg1[%c89] : memref<98xf32, #tpu.memory_space<smem>>
    %c90 = arith.constant 90 : index
    %90 = memref.load %arg1[%c90] : memref<98xf32, #tpu.memory_space<smem>>
    %c91 = arith.constant 91 : index
    %91 = memref.load %arg1[%c91] : memref<98xf32, #tpu.memory_space<smem>>
    %c92 = arith.constant 92 : index
    %92 = memref.load %arg1[%c92] : memref<98xf32, #tpu.memory_space<smem>>
    %c93 = arith.constant 93 : index
    %93 = memref.load %arg1[%c93] : memref<98xf32, #tpu.memory_space<smem>>
    %c94 = arith.constant 94 : index
    %94 = memref.load %arg1[%c94] : memref<98xf32, #tpu.memory_space<smem>>
    %c95 = arith.constant 95 : index
    %95 = memref.load %arg1[%c95] : memref<98xf32, #tpu.memory_space<smem>>
    %c96 = arith.constant 96 : index
    %96 = memref.load %arg1[%c96] : memref<98xf32, #tpu.memory_space<smem>>
    %c97 = arith.constant 97 : index
    %97 = memref.load %arg1[%c97] : memref<98xf32, #tpu.memory_space<smem>>
    %c0_0 = arith.constant 0 : index
    %98 = memref.load %arg2[%c0_0] : memref<2xf32, #tpu.memory_space<smem>>
    %c1_1 = arith.constant 1 : index
    %99 = memref.load %arg2[%c1_1] : memref<2xf32, #tpu.memory_space<smem>>
    %c0_2 = arith.constant 0 : index
    %c0_3 = arith.constant 0 : index
    %c0_4 = arith.constant 0 : index
    %100 = vector.load %arg4[%c0_2, %c0_3, %c0_4] : memref<1x4x256xf32, #tpu.memory_space<vmem>>, vector<1x4x256xf32>
    %cst = arith.constant dense<0xFF800000> : vector<1x256xf32>
    %101 = vector.multi_reduction <maximumf>, %100, %cst [1] : vector<1x4x256xf32> to vector<1x256xf32>
    %cst_5 = arith.constant dense<0.000000e+00> : vector<1x256xf32>
    %102 = vector.multi_reduction <add>, %100, %cst_5 [1] : vector<1x4x256xf32> to vector<1x256xf32>
    %cst_6 = arith.constant 4.000000e+00 : f32
    %103 = vector.broadcast %cst_6 : f32 to vector<1x256xf32>
    %104 = arith.divf %102, %103 : vector<1x256xf32>
    %cst_7 = arith.constant 0.000000e+00 : f32
    %105 = vector.broadcast %cst_7 : f32 to vector<2x1x128xf32>
    %c0_8 = arith.constant 0 : index
    %c0_9 = arith.constant 0 : index
    %c0_10 = arith.constant 0 : index
    %106 = vector.load %arg6[%c0_8, %c0_9, %c0_10] : memref<2x1x512xf32, #tpu.memory_space<vmem>>, vector<2x1x128xf32>
    tpu.vector_store %arg6[%c0_8, %c0_9, %c0_10], %105 {strides = array<i32>} : memref<2x1x512xf32, #tpu.memory_space<vmem>>, vector<2x1x128xf32>,
    %c0_11 = arith.constant 0 : index
    %c0_12 = arith.constant 0 : index
    %c384 = arith.constant 384 : index
    %107 = vector.load %arg6[%c0_11, %c0_12, %c384] : memref<2x1x512xf32, #tpu.memory_space<vmem>>, vector<2x1x128xf32>
    tpu.vector_store %arg6[%c0_11, %c0_12, %c384], %105 {strides = array<i32>} : memref<2x1x512xf32, #tpu.memory_space<vmem>>, vector<2x1x128xf32>,
    %c0_13 = arith.constant 0 : index
    %c0_14 = arith.constant 0 : index
    %c128 = arith.constant 128 : index
    %108 = vector.load %arg6[%c0_13, %c0_14, %c128] : memref<2x1x512xf32, #tpu.memory_space<vmem>>, vector<1x1x256xf32>
    %109 = vector.shape_cast %108 : vector<1x1x256xf32> to vector<1x256xf32>
    %110 = vector.shape_cast %101 : vector<1x256xf32> to vector<1x1x256xf32>
    tpu.vector_store %arg6[%c0_13, %c0_14, %c128], %110 {strides = array<i32>} : memref<2x1x512xf32, #tpu.memory_space<vmem>>, vector<1x1x256xf32>,
    %c1_15 = arith.constant 1 : index
    %c0_16 = arith.constant 0 : index
    %c128_17 = arith.constant 128 : index
    %111 = vector.load %arg6[%c1_15, %c0_16, %c128_17] : memref<2x1x512xf32, #tpu.memory_space<vmem>>, vector<1x1x256xf32>
    %112 = vector.shape_cast %111 : vector<1x1x256xf32> to vector<1x256xf32>
    %113 = vector.shape_cast %104 : vector<1x256xf32> to vector<1x1x256xf32>
    tpu.vector_store %arg6[%c1_15, %c0_16, %c128_17], %113 {strides = array<i32>} : memref<2x1x512xf32, #tpu.memory_space<vmem>>, vector<1x1x256xf32>,
    %cst_18 = arith.constant 0.000000e+00 : f32
    %114 = vector.broadcast %cst_18 : f32 to vector<1x256xf32>
    %c0_19 = arith.constant 0 : index
    %c0_20 = arith.constant 0 : index
    %115 = vector.load %arg3[%c0_19, %c0_20] : memref<7x256xf32, #tpu.memory_space<vmem>>, vector<1x256xf32>
    %cst_21 = arith.constant 0.000000e+00 : f32
    %116 = vector.broadcast %cst_21 : f32 to vector<1x256xf32>
    %c0_22 = arith.constant 0 : index
    %c0_23 = arith.constant 0 : index
    %c77_24 = arith.constant 77 : index
    %117 = vector.load %arg6[%c0_22, %c0_23, %c77_24] : memref<2x1x512xf32, #tpu.memory_space<vmem>>, vector<1x1x256xf32>
    %118 = vector.shape_cast %117 : vector<1x1x256xf32> to vector<1x256xf32>
    %119 = vector.broadcast %0 : f32 to vector<1x256xf32>
    %120 = arith.mulf %119, %118 : vector<1x256xf32>
    %121 = arith.addf %116, %120 : vector<1x256xf32>
    %c0_25 = arith.constant 0 : index
    %c0_26 = arith.constant 0 : index
    %c93_27 = arith.constant 93 : index
    %122 = vector.load %arg6[%c0_25, %c0_26, %c93_27] : memref<2x1x512xf32, #tpu.memory_space<vmem>>, vector<1x1x256xf32>
    %123 = vector.shape_cast %122 : vector<1x1x256xf32> to vector<1x256xf32>
    %124 = vector.broadcast %7 : f32 to vector<1x256xf32>
    %125 = arith.mulf %124, %123 : vector<1x256xf32>
    %126 = arith.addf %121, %125 : vector<1x256xf32>
    %c0_28 = arith.constant 0 : index
    %c0_29 = arith.constant 0 : index
    %c109 = arith.constant 109 : index
    %127 = vector.load %arg6[%c0_28, %c0_29, %c109] : memref<2x1x512xf32, #tpu.memory_space<vmem>>, vector<1x1x256xf32>
    %128 = vector.shape_cast %127 : vector<1x1x256xf32> to vector<1x256xf32>
    %129 = vector.broadcast %14 : f32 to vector<1x256xf32>
    %130 = arith.mulf %129, %128 : vector<1x256xf32>
    %131 = arith.addf %126, %130 : vector<1x256xf32>
    %c0_30 = arith.constant 0 : index
    %c0_31 = arith.constant 0 : index
    %c125 = arith.constant 125 : index
    %132 = vector.load %arg6[%c0_30, %c0_31, %c125] : memref<2x1x512xf32, #tpu.memory_space<vmem>>, vector<1x1x256xf32>
    %133 = vector.shape_cast %132 : vector<1x1x256xf32> to vector<1x256xf32>
    %134 = vector.broadcast %21 : f32 to vector<1x256xf32>
    %135 = arith.mulf %134, %133 : vector<1x256xf32>
    %136 = arith.addf %131, %135 : vector<1x256xf32>
    %c0_32 = arith.constant 0 : index
    %c0_33 = arith.constant 0 : index
    %c141 = arith.constant 141 : index
    %137 = vector.load %arg6[%c0_32, %c0_33, %c141] : memref<2x1x512xf32, #tpu.memory_space<vmem>>, vector<1x1x256xf32>
    %138 = vector.shape_cast %137 : vector<1x1x256xf32> to vector<1x256xf32>
    %139 = vector.broadcast %28 : f32 to vector<1x256xf32>
    %140 = arith.mulf %139, %138 : vector<1x256xf32>
    %141 = arith.addf %136, %140 : vector<1x256xf32>
    %c0_34 = arith.constant 0 : index
    %c0_35 = arith.constant 0 : index
    %c157 = arith.constant 157 : index
    %142 = vector.load %arg6[%c0_34, %c0_35, %c157] : memref<2x1x512xf32, #tpu.memory_space<vmem>>, vector<1x1x256xf32>
    %143 = vector.shape_cast %142 : vector<1x1x256xf32> to vector<1x256xf32>
    %144 = vector.broadcast %35 : f32 to vector<1x256xf32>
    %145 = arith.mulf %144, %143 : vector<1x256xf32>
    %146 = arith.addf %141, %145 : vector<1x256xf32>
    %c0_36 = arith.constant 0 : index
    %c0_37 = arith.constant 0 : index
    %c173 = arith.constant 173 : index
    %147 = vector.load %arg6[%c0_36, %c0_37, %c173] : memref<2x1x512xf32, #tpu.memory_space<vmem>>, vector<1x1x256xf32>
    %148 = vector.shape_cast %147 : vector<1x1x256xf32> to vector<1x256xf32>
    %149 = vector.broadcast %42 : f32 to vector<1x256xf32>
    %150 = arith.mulf %149, %148 : vector<1x256xf32>
    %151 = arith.addf %146, %150 : vector<1x256xf32>
    %152 = arith.mulf %115, %151 : vector<1x256xf32>
    %153 = arith.addf %114, %152 : vector<1x256xf32>
    %cst_38 = arith.constant 0.000000e+00 : f32
    %154 = vector.broadcast %cst_38 : f32 to vector<1x256xf32>
    %c1_39 = arith.constant 1 : index
    %c0_40 = arith.constant 0 : index
    %c77_41 = arith.constant 77 : index
    %155 = vector.load %arg6[%c1_39, %c0_40, %c77_41] : memref<2x1x512xf32, #tpu.memory_space<vmem>>, vector<1x1x256xf32>
    %156 = vector.shape_cast %155 : vector<1x1x256xf32> to vector<1x256xf32>
    %157 = vector.broadcast %49 : f32 to vector<1x256xf32>
    %158 = arith.mulf %157, %156 : vector<1x256xf32>
    %159 = arith.addf %154, %158 : vector<1x256xf32>
    %c1_42 = arith.constant 1 : index
    %c0_43 = arith.constant 0 : index
    %c93_44 = arith.constant 93 : index
    %160 = vector.load %arg6[%c1_42, %c0_43, %c93_44] : memref<2x1x512xf32, #tpu.memory_space<vmem>>, vector<1x1x256xf32>
    %161 = vector.shape_cast %160 : vector<1x1x256xf32> to vector<1x256xf32>
    %162 = vector.broadcast %56 : f32 to vector<1x256xf32>
    %163 = arith.mulf %162, %161 : vector<1x256xf32>
    %164 = arith.addf %159, %163 : vector<1x256xf32>
    %c1_45 = arith.constant 1 : index
    %c0_46 = arith.constant 0 : index
    %c109_47 = arith.constant 109 : index
    %165 = vector.load %arg6[%c1_45, %c0_46, %c109_47] : memref<2x1x512xf32, #tpu.memory_space<vmem>>, vector<1x1x256xf32>
    %166 = vector.shape_cast %165 : vector<1x1x256xf32> to vector<1x256xf32>
    %167 = vector.broadcast %63 : f32 to vector<1x256xf32>
    %168 = arith.mulf %167, %166 : vector<1x256xf32>
    %169 = arith.addf %164, %168 : vector<1x256xf32>
    %c1_48 = arith.constant 1 : index
    %c0_49 = arith.constant 0 : index
    %c125_50 = arith.constant 125 : index
    %170 = vector.load %arg6[%c1_48, %c0_49, %c125_50] : memref<2x1x512xf32, #tpu.memory_space<vmem>>, vector<1x1x256xf32>
    %171 = vector.shape_cast %170 : vector<1x1x256xf32> to vector<1x256xf32>
    %172 = vector.broadcast %70 : f32 to vector<1x256xf32>
    %173 = arith.mulf %172, %171 : vector<1x256xf32>
    %174 = arith.addf %169, %173 : vector<1x256xf32>
    %c1_51 = arith.constant 1 : index
    %c0_52 = arith.constant 0 : index
    %c141_53 = arith.constant 141 : index
    %175 = vector.load %arg6[%c1_51, %c0_52, %c141_53] : memref<2x1x512xf32, #tpu.memory_space<vmem>>, vector<1x1x256xf32>
    %176 = vector.shape_cast %175 : vector<1x1x256xf32> to vector<1x256xf32>
    %177 = vector.broadcast %77 : f32 to vector<1x256xf32>
    %178 = arith.mulf %177, %176 : vector<1x256xf32>
    %179 = arith.addf %174, %178 : vector<1x256xf32>
    %c1_54 = arith.constant 1 : index
    %c0_55 = arith.constant 0 : index
    %c157_56 = arith.constant 157 : index
    %180 = vector.load %arg6[%c1_54, %c0_55, %c157_56] : memref<2x1x512xf32, #tpu.memory_space<vmem>>, vector<1x1x256xf32>
    %181 = vector.shape_cast %180 : vector<1x1x256xf32> to vector<1x256xf32>
    %182 = vector.broadcast %84 : f32 to vector<1x256xf32>
    %183 = arith.mulf %182, %181 : vector<1x256xf32>
    %184 = arith.addf %179, %183 : vector<1x256xf32>
    %c1_57 = arith.constant 1 : index
    %c0_58 = arith.constant 0 : index
    %c173_59 = arith.constant 173 : index
    %185 = vector.load %arg6[%c1_57, %c0_58, %c173_59] : memref<2x1x512xf32, #tpu.memory_space<vmem>>, vector<1x1x256xf32>
    %186 = vector.shape_cast %185 : vector<1x1x256xf32> to vector<1x256xf32>
    %187 = vector.broadcast %91 : f32 to vector<1x256xf32>
    %188 = arith.mulf %187, %186 : vector<1x256xf32>
    %189 = arith.addf %184, %188 : vector<1x256xf32>
    %190 = arith.mulf %115, %189 : vector<1x256xf32>
    %191 = arith.addf %153, %190 : vector<1x256xf32>
    %c1_60 = arith.constant 1 : index
    %c0_61 = arith.constant 0 : index
    %192 = vector.load %arg3[%c1_60, %c0_61] : memref<7x256xf32, #tpu.memory_space<vmem>>, vector<1x256xf32>
    %cst_62 = arith.constant 0.000000e+00 : f32
    %193 = vector.broadcast %cst_62 : f32 to vector<1x256xf32>
    %c0_63 = arith.constant 0 : index
    %c0_64 = arith.constant 0 : index
    %c78_65 = arith.constant 78 : index
    %194 = vector.load %arg6[%c0_63, %c0_64, %c78_65] : memref<2x1x512xf32, #tpu.memory_space<vmem>>, vector<1x1x256xf32>
    %195 = vector.shape_cast %194 : vector<1x1x256xf32> to vector<1x256xf32>
    %196 = vector.broadcast %1 : f32 to vector<1x256xf32>
    %197 = arith.mulf %196, %195 : vector<1x256xf32>
    %198 = arith.addf %193, %197 : vector<1x256xf32>
    %c0_66 = arith.constant 0 : index
    %c0_67 = arith.constant 0 : index
    %c94_68 = arith.constant 94 : index
    %199 = vector.load %arg6[%c0_66, %c0_67, %c94_68] : memref<2x1x512xf32, #tpu.memory_space<vmem>>, vector<1x1x256xf32>
    %200 = vector.shape_cast %199 : vector<1x1x256xf32> to vector<1x256xf32>
    %201 = vector.broadcast %8 : f32 to vector<1x256xf32>
    %202 = arith.mulf %201, %200 : vector<1x256xf32>
    %203 = arith.addf %198, %202 : vector<1x256xf32>
    %c0_69 = arith.constant 0 : index
    %c0_70 = arith.constant 0 : index
    %c110 = arith.constant 110 : index
    %204 = vector.load %arg6[%c0_69, %c0_70, %c110] : memref<2x1x512xf32, #tpu.memory_space<vmem>>, vector<1x1x256xf32>
    %205 = vector.shape_cast %204 : vector<1x1x256xf32> to vector<1x256xf32>
    %206 = vector.broadcast %15 : f32 to vector<1x256xf32>
    %207 = arith.mulf %206, %205 : vector<1x256xf32>
    %208 = arith.addf %203, %207 : vector<1x256xf32>
    %c0_71 = arith.constant 0 : index
    %c0_72 = arith.constant 0 : index
    %c126 = arith.constant 126 : index
    %209 = vector.load %arg6[%c0_71, %c0_72, %c126] : memref<2x1x512xf32, #tpu.memory_space<vmem>>, vector<1x1x256xf32>
    %210 = vector.shape_cast %209 : vector<1x1x256xf32> to vector<1x256xf32>
    %211 = vector.broadcast %22 : f32 to vector<1x256xf32>
    %212 = arith.mulf %211, %210 : vector<1x256xf32>
    %213 = arith.addf %208, %212 : vector<1x256xf32>
    %c0_73 = arith.constant 0 : index
    %c0_74 = arith.constant 0 : index
    %c142 = arith.constant 142 : index
    %214 = vector.load %arg6[%c0_73, %c0_74, %c142] : memref<2x1x512xf32, #tpu.memory_space<vmem>>, vector<1x1x256xf32>
    %215 = vector.shape_cast %214 : vector<1x1x256xf32> to vector<1x256xf32>
    %216 = vector.broadcast %29 : f32 to vector<1x256xf32>
    %217 = arith.mulf %216, %215 : vector<1x256xf32>
    %218 = arith.addf %213, %217 : vector<1x256xf32>
    %c0_75 = arith.constant 0 : index
    %c0_76 = arith.constant 0 : index
    %c158 = arith.constant 158 : index
    %219 = vector.load %arg6[%c0_75, %c0_76, %c158] : memref<2x1x512xf32, #tpu.memory_space<vmem>>, vector<1x1x256xf32>
    %220 = vector.shape_cast %219 : vector<1x1x256xf32> to vector<1x256xf32>
    %221 = vector.broadcast %36 : f32 to vector<1x256xf32>
    %222 = arith.mulf %221, %220 : vector<1x256xf32>
    %223 = arith.addf %218, %222 : vector<1x256xf32>
    %c0_77 = arith.constant 0 : index
    %c0_78 = arith.constant 0 : index
    %c174 = arith.constant 174 : index
    %224 = vector.load %arg6[%c0_77, %c0_78, %c174] : memref<2x1x512xf32, #tpu.memory_space<vmem>>, vector<1x1x256xf32>
    %225 = vector.shape_cast %224 : vector<1x1x256xf32> to vector<1x256xf32>
    %226 = vector.broadcast %43 : f32 to vector<1x256xf32>
    %227 = arith.mulf %226, %225 : vector<1x256xf32>
    %228 = arith.addf %223, %227 : vector<1x256xf32>
    %229 = arith.mulf %192, %228 : vector<1x256xf32>
    %230 = arith.addf %191, %229 : vector<1x256xf32>
    %cst_79 = arith.constant 0.000000e+00 : f32
    %231 = vector.broadcast %cst_79 : f32 to vector<1x256xf32>
    %c1_80 = arith.constant 1 : index
    %c0_81 = arith.constant 0 : index
    %c78_82 = arith.constant 78 : index
    %232 = vector.load %arg6[%c1_80, %c0_81, %c78_82] : memref<2x1x512xf32, #tpu.memory_space<vmem>>, vector<1x1x256xf32>
    %233 = vector.shape_cast %232 : vector<1x1x256xf32> to vector<1x256xf32>
    %234 = vector.broadcast %50 : f32 to vector<1x256xf32>
    %235 = arith.mulf %234, %233 : vector<1x256xf32>
    %236 = arith.addf %231, %235 : vector<1x256xf32>
    %c1_83 = arith.constant 1 : index
    %c0_84 = arith.constant 0 : index
    %c94_85 = arith.constant 94 : index
    %237 = vector.load %arg6[%c1_83, %c0_84, %c94_85] : memref<2x1x512xf32, #tpu.memory_space<vmem>>, vector<1x1x256xf32>
    %238 = vector.shape_cast %237 : vector<1x1x256xf32> to vector<1x256xf32>
    %239 = vector.broadcast %57 : f32 to vector<1x256xf32>
    %240 = arith.mulf %239, %238 : vector<1x256xf32>
    %241 = arith.addf %236, %240 : vector<1x256xf32>
    %c1_86 = arith.constant 1 : index
    %c0_87 = arith.constant 0 : index
    %c110_88 = arith.constant 110 : index
    %242 = vector.load %arg6[%c1_86, %c0_87, %c110_88] : memref<2x1x512xf32, #tpu.memory_space<vmem>>, vector<1x1x256xf32>
    %243 = vector.shape_cast %242 : vector<1x1x256xf32> to vector<1x256xf32>
    %244 = vector.broadcast %64 : f32 to vector<1x256xf32>
    %245 = arith.mulf %244, %243 : vector<1x256xf32>
    %246 = arith.addf %241, %245 : vector<1x256xf32>
    %c1_89 = arith.constant 1 : index
    %c0_90 = arith.constant 0 : index
    %c126_91 = arith.constant 126 : index
    %247 = vector.load %arg6[%c1_89, %c0_90, %c126_91] : memref<2x1x512xf32, #tpu.memory_space<vmem>>, vector<1x1x256xf32>
    %248 = vector.shape_cast %247 : vector<1x1x256xf32> to vector<1x256xf32>
    %249 = vector.broadcast %71 : f32 to vector<1x256xf32>
    %250 = arith.mulf %249, %248 : vector<1x256xf32>
    %251 = arith.addf %246, %250 : vector<1x256xf32>
    %c1_92 = arith.constant 1 : index
    %c0_93 = arith.constant 0 : index
    %c142_94 = arith.constant 142 : index
    %252 = vector.load %arg6[%c1_92, %c0_93, %c142_94] : memref<2x1x512xf32, #tpu.memory_space<vmem>>, vector<1x1x256xf32>
    %253 = vector.shape_cast %252 : vector<1x1x256xf32> to vector<1x256xf32>
    %254 = vector.broadcast %78 : f32 to vector<1x256xf32>
    %255 = arith.mulf %254, %253 : vector<1x256xf32>
    %256 = arith.addf %251, %255 : vector<1x256xf32>
    %c1_95 = arith.constant 1 : index
    %c0_96 = arith.constant 0 : index
    %c158_97 = arith.constant 158 : index
    %257 = vector.load %arg6[%c1_95, %c0_96, %c158_97] : memref<2x1x512xf32, #tpu.memory_space<vmem>>, vector<1x1x256xf32>
    %258 = vector.shape_cast %257 : vector<1x1x256xf32> to vector<1x256xf32>
    %259 = vector.broadcast %85 : f32 to vector<1x256xf32>
    %260 = arith.mulf %259, %258 : vector<1x256xf32>
    %261 = arith.addf %256, %260 : vector<1x256xf32>
    %c1_98 = arith.constant 1 : index
    %c0_99 = arith.constant 0 : index
    %c174_100 = arith.constant 174 : index
    %262 = vector.load %arg6[%c1_98, %c0_99, %c174_100] : memref<2x1x512xf32, #tpu.memory_space<vmem>>, vector<1x1x256xf32>
    %263 = vector.shape_cast %262 : vector<1x1x256xf32> to vector<1x256xf32>
    %264 = vector.broadcast %92 : f32 to vector<1x256xf32>
    %265 = arith.mulf %264, %263 : vector<1x256xf32>
    %266 = arith.addf %261, %265 : vector<1x256xf32>
    %267 = arith.mulf %192, %266 : vector<1x256xf32>
    %268 = arith.addf %230, %267 : vector<1x256xf32>
    %c2_101 = arith.constant 2 : index
    %c0_102 = arith.constant 0 : index
    %269 = vector.load %arg3[%c2_101, %c0_102] : memref<7x256xf32, #tpu.memory_space<vmem>>, vector<1x256xf32>
    %cst_103 = arith.constant 0.000000e+00 : f32
    %270 = vector.broadcast %cst_103 : f32 to vector<1x256xf32>
    %c0_104 = arith.constant 0 : index
    %c0_105 = arith.constant 0 : index
    %c79_106 = arith.constant 79 : index
    %271 = vector.load %arg6[%c0_104, %c0_105, %c79_106] : memref<2x1x512xf32, #tpu.memory_space<vmem>>, vector<1x1x256xf32>
    %272 = vector.shape_cast %271 : vector<1x1x256xf32> to vector<1x256xf32>
    %273 = vector.broadcast %2 : f32 to vector<1x256xf32>
    %274 = arith.mulf %273, %272 : vector<1x256xf32>
    %275 = arith.addf %270, %274 : vector<1x256xf32>
    %c0_107 = arith.constant 0 : index
    %c0_108 = arith.constant 0 : index
    %c95_109 = arith.constant 95 : index
    %276 = vector.load %arg6[%c0_107, %c0_108, %c95_109] : memref<2x1x512xf32, #tpu.memory_space<vmem>>, vector<1x1x256xf32>
    %277 = vector.shape_cast %276 : vector<1x1x256xf32> to vector<1x256xf32>
    %278 = vector.broadcast %9 : f32 to vector<1x256xf32>
    %279 = arith.mulf %278, %277 : vector<1x256xf32>
    %280 = arith.addf %275, %279 : vector<1x256xf32>
    %c0_110 = arith.constant 0 : index
    %c0_111 = arith.constant 0 : index
    %c111 = arith.constant 111 : index
    %281 = vector.load %arg6[%c0_110, %c0_111, %c111] : memref<2x1x512xf32, #tpu.memory_space<vmem>>, vector<1x1x256xf32>
    %282 = vector.shape_cast %281 : vector<1x1x256xf32> to vector<1x256xf32>
    %283 = vector.broadcast %16 : f32 to vector<1x256xf32>
    %284 = arith.mulf %283, %282 : vector<1x256xf32>
    %285 = arith.addf %280, %284 : vector<1x256xf32>
    %c0_112 = arith.constant 0 : index
    %c0_113 = arith.constant 0 : index
    %c127 = arith.constant 127 : index
    %286 = vector.load %arg6[%c0_112, %c0_113, %c127] : memref<2x1x512xf32, #tpu.memory_space<vmem>>, vector<1x1x256xf32>
    %287 = vector.shape_cast %286 : vector<1x1x256xf32> to vector<1x256xf32>
    %288 = vector.broadcast %23 : f32 to vector<1x256xf32>
    %289 = arith.mulf %288, %287 : vector<1x256xf32>
    %290 = arith.addf %285, %289 : vector<1x256xf32>
    %c0_114 = arith.constant 0 : index
    %c0_115 = arith.constant 0 : index
    %c143 = arith.constant 143 : index
    %291 = vector.load %arg6[%c0_114, %c0_115, %c143] : memref<2x1x512xf32, #tpu.memory_space<vmem>>, vector<1x1x256xf32>
    %292 = vector.shape_cast %291 : vector<1x1x256xf32> to vector<1x256xf32>
    %293 = vector.broadcast %30 : f32 to vector<1x256xf32>
    %294 = arith.mulf %293, %292 : vector<1x256xf32>
    %295 = arith.addf %290, %294 : vector<1x256xf32>
    %c0_116 = arith.constant 0 : index
    %c0_117 = arith.constant 0 : index
    %c159 = arith.constant 159 : index
    %296 = vector.load %arg6[%c0_116, %c0_117, %c159] : memref<2x1x512xf32, #tpu.memory_space<vmem>>, vector<1x1x256xf32>
    %297 = vector.shape_cast %296 : vector<1x1x256xf32> to vector<1x256xf32>
    %298 = vector.broadcast %37 : f32 to vector<1x256xf32>
    %299 = arith.mulf %298, %297 : vector<1x256xf32>
    %300 = arith.addf %295, %299 : vector<1x256xf32>
    %c0_118 = arith.constant 0 : index
    %c0_119 = arith.constant 0 : index
    %c175 = arith.constant 175 : index
    %301 = vector.load %arg6[%c0_118, %c0_119, %c175] : memref<2x1x512xf32, #tpu.memory_space<vmem>>, vector<1x1x256xf32>
    %302 = vector.shape_cast %301 : vector<1x1x256xf32> to vector<1x256xf32>
    %303 = vector.broadcast %44 : f32 to vector<1x256xf32>
    %304 = arith.mulf %303, %302 : vector<1x256xf32>
    %305 = arith.addf %300, %304 : vector<1x256xf32>
    %306 = arith.mulf %269, %305 : vector<1x256xf32>
    %307 = arith.addf %268, %306 : vector<1x256xf32>
    %cst_120 = arith.constant 0.000000e+00 : f32
    %308 = vector.broadcast %cst_120 : f32 to vector<1x256xf32>
    %c1_121 = arith.constant 1 : index
    %c0_122 = arith.constant 0 : index
    %c79_123 = arith.constant 79 : index
    %309 = vector.load %arg6[%c1_121, %c0_122, %c79_123] : memref<2x1x512xf32, #tpu.memory_space<vmem>>, vector<1x1x256xf32>
    %310 = vector.shape_cast %309 : vector<1x1x256xf32> to vector<1x256xf32>
    %311 = vector.broadcast %51 : f32 to vector<1x256xf32>
    %312 = arith.mulf %311, %310 : vector<1x256xf32>
    %313 = arith.addf %308, %312 : vector<1x256xf32>
    %c1_124 = arith.constant 1 : index
    %c0_125 = arith.constant 0 : index
    %c95_126 = arith.constant 95 : index
    %314 = vector.load %arg6[%c1_124, %c0_125, %c95_126] : memref<2x1x512xf32, #tpu.memory_space<vmem>>, vector<1x1x256xf32>
    %315 = vector.shape_cast %314 : vector<1x1x256xf32> to vector<1x256xf32>
    %316 = vector.broadcast %58 : f32 to vector<1x256xf32>
    %317 = arith.mulf %316, %315 : vector<1x256xf32>
    %318 = arith.addf %313, %317 : vector<1x256xf32>
    %c1_127 = arith.constant 1 : index
    %c0_128 = arith.constant 0 : index
    %c111_129 = arith.constant 111 : index
    %319 = vector.load %arg6[%c1_127, %c0_128, %c111_129] : memref<2x1x512xf32, #tpu.memory_space<vmem>>, vector<1x1x256xf32>
    %320 = vector.shape_cast %319 : vector<1x1x256xf32> to vector<1x256xf32>
    %321 = vector.broadcast %65 : f32 to vector<1x256xf32>
    %322 = arith.mulf %321, %320 : vector<1x256xf32>
    %323 = arith.addf %318, %322 : vector<1x256xf32>
    %c1_130 = arith.constant 1 : index
    %c0_131 = arith.constant 0 : index
    %c127_132 = arith.constant 127 : index
    %324 = vector.load %arg6[%c1_130, %c0_131, %c127_132] : memref<2x1x512xf32, #tpu.memory_space<vmem>>, vector<1x1x256xf32>
    %325 = vector.shape_cast %324 : vector<1x1x256xf32> to vector<1x256xf32>
    %326 = vector.broadcast %72 : f32 to vector<1x256xf32>
    %327 = arith.mulf %326, %325 : vector<1x256xf32>
    %328 = arith.addf %323, %327 : vector<1x256xf32>
    %c1_133 = arith.constant 1 : index
    %c0_134 = arith.constant 0 : index
    %c143_135 = arith.constant 143 : index
    %329 = vector.load %arg6[%c1_133, %c0_134, %c143_135] : memref<2x1x512xf32, #tpu.memory_space<vmem>>, vector<1x1x256xf32>
    %330 = vector.shape_cast %329 : vector<1x1x256xf32> to vector<1x256xf32>
    %331 = vector.broadcast %79 : f32 to vector<1x256xf32>
    %332 = arith.mulf %331, %330 : vector<1x256xf32>
    %333 = arith.addf %328, %332 : vector<1x256xf32>
    %c1_136 = arith.constant 1 : index
    %c0_137 = arith.constant 0 : index
    %c159_138 = arith.constant 159 : index
    %334 = vector.load %arg6[%c1_136, %c0_137, %c159_138] : memref<2x1x512xf32, #tpu.memory_space<vmem>>, vector<1x1x256xf32>
    %335 = vector.shape_cast %334 : vector<1x1x256xf32> to vector<1x256xf32>
    %336 = vector.broadcast %86 : f32 to vector<1x256xf32>
    %337 = arith.mulf %336, %335 : vector<1x256xf32>
    %338 = arith.addf %333, %337 : vector<1x256xf32>
    %c1_139 = arith.constant 1 : index
    %c0_140 = arith.constant 0 : index
    %c175_141 = arith.constant 175 : index
    %339 = vector.load %arg6[%c1_139, %c0_140, %c175_141] : memref<2x1x512xf32, #tpu.memory_space<vmem>>, vector<1x1x256xf32>
    %340 = vector.shape_cast %339 : vector<1x1x256xf32> to vector<1x256xf32>
    %341 = vector.broadcast %93 : f32 to vector<1x256xf32>
    %342 = arith.mulf %341, %340 : vector<1x256xf32>
    %343 = arith.addf %338, %342 : vector<1x256xf32>
    %344 = arith.mulf %269, %343 : vector<1x256xf32>
    %345 = arith.addf %307, %344 : vector<1x256xf32>
    %c3_142 = arith.constant 3 : index
    %c0_143 = arith.constant 0 : index
    %346 = vector.load %arg3[%c3_142, %c0_143] : memref<7x256xf32, #tpu.memory_space<vmem>>, vector<1x256xf32>
    %cst_144 = arith.constant 0.000000e+00 : f32
    %347 = vector.broadcast %cst_144 : f32 to vector<1x256xf32>
    %c0_145 = arith.constant 0 : index
    %c0_146 = arith.constant 0 : index
    %c80_147 = arith.constant 80 : index
    %348 = vector.load %arg6[%c0_145, %c0_146, %c80_147] : memref<2x1x512xf32, #tpu.memory_space<vmem>>, vector<1x1x256xf32>
    %349 = vector.shape_cast %348 : vector<1x1x256xf32> to vector<1x256xf32>
    %350 = vector.broadcast %3 : f32 to vector<1x256xf32>
    %351 = arith.mulf %350, %349 : vector<1x256xf32>
    %352 = arith.addf %347, %351 : vector<1x256xf32>
    %c0_148 = arith.constant 0 : index
    %c0_149 = arith.constant 0 : index
    %c96_150 = arith.constant 96 : index
    %353 = vector.load %arg6[%c0_148, %c0_149, %c96_150] : memref<2x1x512xf32, #tpu.memory_space<vmem>>, vector<1x1x256xf32>
    %354 = vector.shape_cast %353 : vector<1x1x256xf32> to vector<1x256xf32>
    %355 = vector.broadcast %10 : f32 to vector<1x256xf32>
    %356 = arith.mulf %355, %354 : vector<1x256xf32>
    %357 = arith.addf %352, %356 : vector<1x256xf32>
    %c0_151 = arith.constant 0 : index
    %c0_152 = arith.constant 0 : index
    %c112 = arith.constant 112 : index
    %358 = vector.load %arg6[%c0_151, %c0_152, %c112] : memref<2x1x512xf32, #tpu.memory_space<vmem>>, vector<1x1x256xf32>
    %359 = vector.shape_cast %358 : vector<1x1x256xf32> to vector<1x256xf32>
    %360 = vector.broadcast %17 : f32 to vector<1x256xf32>
    %361 = arith.mulf %360, %359 : vector<1x256xf32>
    %362 = arith.addf %357, %361 : vector<1x256xf32>
    %c0_153 = arith.constant 0 : index
    %c0_154 = arith.constant 0 : index
    %c128_155 = arith.constant 128 : index
    %363 = vector.load %arg6[%c0_153, %c0_154, %c128_155] : memref<2x1x512xf32, #tpu.memory_space<vmem>>, vector<1x1x256xf32>
    %364 = vector.shape_cast %363 : vector<1x1x256xf32> to vector<1x256xf32>
    %365 = vector.broadcast %24 : f32 to vector<1x256xf32>
    %366 = arith.mulf %365, %364 : vector<1x256xf32>
    %367 = arith.addf %362, %366 : vector<1x256xf32>
    %c0_156 = arith.constant 0 : index
    %c0_157 = arith.constant 0 : index
    %c144 = arith.constant 144 : index
    %368 = vector.load %arg6[%c0_156, %c0_157, %c144] : memref<2x1x512xf32, #tpu.memory_space<vmem>>, vector<1x1x256xf32>
    %369 = vector.shape_cast %368 : vector<1x1x256xf32> to vector<1x256xf32>
    %370 = vector.broadcast %31 : f32 to vector<1x256xf32>
    %371 = arith.mulf %370, %369 : vector<1x256xf32>
    %372 = arith.addf %367, %371 : vector<1x256xf32>
    %c0_158 = arith.constant 0 : index
    %c0_159 = arith.constant 0 : index
    %c160 = arith.constant 160 : index
    %373 = vector.load %arg6[%c0_158, %c0_159, %c160] : memref<2x1x512xf32, #tpu.memory_space<vmem>>, vector<1x1x256xf32>
    %374 = vector.shape_cast %373 : vector<1x1x256xf32> to vector<1x256xf32>
    %375 = vector.broadcast %38 : f32 to vector<1x256xf32>
    %376 = arith.mulf %375, %374 : vector<1x256xf32>
    %377 = arith.addf %372, %376 : vector<1x256xf32>
    %c0_160 = arith.constant 0 : index
    %c0_161 = arith.constant 0 : index
    %c176 = arith.constant 176 : index
    %378 = vector.load %arg6[%c0_160, %c0_161, %c176] : memref<2x1x512xf32, #tpu.memory_space<vmem>>, vector<1x1x256xf32>
    %379 = vector.shape_cast %378 : vector<1x1x256xf32> to vector<1x256xf32>
    %380 = vector.broadcast %45 : f32 to vector<1x256xf32>
    %381 = arith.mulf %380, %379 : vector<1x256xf32>
    %382 = arith.addf %377, %381 : vector<1x256xf32>
    %383 = arith.mulf %346, %382 : vector<1x256xf32>
    %384 = arith.addf %345, %383 : vector<1x256xf32>
    %cst_162 = arith.constant 0.000000e+00 : f32
    %385 = vector.broadcast %cst_162 : f32 to vector<1x256xf32>
    %c1_163 = arith.constant 1 : index
    %c0_164 = arith.constant 0 : index
    %c80_165 = arith.constant 80 : index
    %386 = vector.load %arg6[%c1_163, %c0_164, %c80_165] : memref<2x1x512xf32, #tpu.memory_space<vmem>>, vector<1x1x256xf32>
    %387 = vector.shape_cast %386 : vector<1x1x256xf32> to vector<1x256xf32>
    %388 = vector.broadcast %52 : f32 to vector<1x256xf32>
    %389 = arith.mulf %388, %387 : vector<1x256xf32>
    %390 = arith.addf %385, %389 : vector<1x256xf32>
    %c1_166 = arith.constant 1 : index
    %c0_167 = arith.constant 0 : index
    %c96_168 = arith.constant 96 : index
    %391 = vector.load %arg6[%c1_166, %c0_167, %c96_168] : memref<2x1x512xf32, #tpu.memory_space<vmem>>, vector<1x1x256xf32>
    %392 = vector.shape_cast %391 : vector<1x1x256xf32> to vector<1x256xf32>
    %393 = vector.broadcast %59 : f32 to vector<1x256xf32>
    %394 = arith.mulf %393, %392 : vector<1x256xf32>
    %395 = arith.addf %390, %394 : vector<1x256xf32>
    %c1_169 = arith.constant 1 : index
    %c0_170 = arith.constant 0 : index
    %c112_171 = arith.constant 112 : index
    %396 = vector.load %arg6[%c1_169, %c0_170, %c112_171] : memref<2x1x512xf32, #tpu.memory_space<vmem>>, vector<1x1x256xf32>
    %397 = vector.shape_cast %396 : vector<1x1x256xf32> to vector<1x256xf32>
    %398 = vector.broadcast %66 : f32 to vector<1x256xf32>
    %399 = arith.mulf %398, %397 : vector<1x256xf32>
    %400 = arith.addf %395, %399 : vector<1x256xf32>
    %c1_172 = arith.constant 1 : index
    %c0_173 = arith.constant 0 : index
    %c128_174 = arith.constant 128 : index
    %401 = vector.load %arg6[%c1_172, %c0_173, %c128_174] : memref<2x1x512xf32, #tpu.memory_space<vmem>>, vector<1x1x256xf32>
    %402 = vector.shape_cast %401 : vector<1x1x256xf32> to vector<1x256xf32>
    %403 = vector.broadcast %73 : f32 to vector<1x256xf32>
    %404 = arith.mulf %403, %402 : vector<1x256xf32>
    %405 = arith.addf %400, %404 : vector<1x256xf32>
    %c1_175 = arith.constant 1 : index
    %c0_176 = arith.constant 0 : index
    %c144_177 = arith.constant 144 : index
    %406 = vector.load %arg6[%c1_175, %c0_176, %c144_177] : memref<2x1x512xf32, #tpu.memory_space<vmem>>, vector<1x1x256xf32>
    %407 = vector.shape_cast %406 : vector<1x1x256xf32> to vector<1x256xf32>
    %408 = vector.broadcast %80 : f32 to vector<1x256xf32>
    %409 = arith.mulf %408, %407 : vector<1x256xf32>
    %410 = arith.addf %405, %409 : vector<1x256xf32>
    %c1_178 = arith.constant 1 : index
    %c0_179 = arith.constant 0 : index
    %c160_180 = arith.constant 160 : index
    %411 = vector.load %arg6[%c1_178, %c0_179, %c160_180] : memref<2x1x512xf32, #tpu.memory_space<vmem>>, vector<1x1x256xf32>
    %412 = vector.shape_cast %411 : vector<1x1x256xf32> to vector<1x256xf32>
    %413 = vector.broadcast %87 : f32 to vector<1x256xf32>
    %414 = arith.mulf %413, %412 : vector<1x256xf32>
    %415 = arith.addf %410, %414 : vector<1x256xf32>
    %c1_181 = arith.constant 1 : index
    %c0_182 = arith.constant 0 : index
    %c176_183 = arith.constant 176 : index
    %416 = vector.load %arg6[%c1_181, %c0_182, %c176_183] : memref<2x1x512xf32, #tpu.memory_space<vmem>>, vector<1x1x256xf32>
    %417 = vector.shape_cast %416 : vector<1x1x256xf32> to vector<1x256xf32>
    %418 = vector.broadcast %94 : f32 to vector<1x256xf32>
    %419 = arith.mulf %418, %417 : vector<1x256xf32>
    %420 = arith.addf %415, %419 : vector<1x256xf32>
    %421 = arith.mulf %346, %420 : vector<1x256xf32>
    %422 = arith.addf %384, %421 : vector<1x256xf32>
    %c4_184 = arith.constant 4 : index
    %c0_185 = arith.constant 0 : index
    %423 = vector.load %arg3[%c4_184, %c0_185] : memref<7x256xf32, #tpu.memory_space<vmem>>, vector<1x256xf32>
    %cst_186 = arith.constant 0.000000e+00 : f32
    %424 = vector.broadcast %cst_186 : f32 to vector<1x256xf32>
    %c0_187 = arith.constant 0 : index
    %c0_188 = arith.constant 0 : index
    %c81_189 = arith.constant 81 : index
    %425 = vector.load %arg6[%c0_187, %c0_188, %c81_189] : memref<2x1x512xf32, #tpu.memory_space<vmem>>, vector<1x1x256xf32>
    %426 = vector.shape_cast %425 : vector<1x1x256xf32> to vector<1x256xf32>
    %427 = vector.broadcast %4 : f32 to vector<1x256xf32>
    %428 = arith.mulf %427, %426 : vector<1x256xf32>
    %429 = arith.addf %424, %428 : vector<1x256xf32>
    %c0_190 = arith.constant 0 : index
    %c0_191 = arith.constant 0 : index
    %c97_192 = arith.constant 97 : index
    %430 = vector.load %arg6[%c0_190, %c0_191, %c97_192] : memref<2x1x512xf32, #tpu.memory_space<vmem>>, vector<1x1x256xf32>
    %431 = vector.shape_cast %430 : vector<1x1x256xf32> to vector<1x256xf32>
    %432 = vector.broadcast %11 : f32 to vector<1x256xf32>
    %433 = arith.mulf %432, %431 : vector<1x256xf32>
    %434 = arith.addf %429, %433 : vector<1x256xf32>
    %c0_193 = arith.constant 0 : index
    %c0_194 = arith.constant 0 : index
    %c113 = arith.constant 113 : index
    %435 = vector.load %arg6[%c0_193, %c0_194, %c113] : memref<2x1x512xf32, #tpu.memory_space<vmem>>, vector<1x1x256xf32>
    %436 = vector.shape_cast %435 : vector<1x1x256xf32> to vector<1x256xf32>
    %437 = vector.broadcast %18 : f32 to vector<1x256xf32>
    %438 = arith.mulf %437, %436 : vector<1x256xf32>
    %439 = arith.addf %434, %438 : vector<1x256xf32>
    %c0_195 = arith.constant 0 : index
    %c0_196 = arith.constant 0 : index
    %c129 = arith.constant 129 : index
    %440 = vector.load %arg6[%c0_195, %c0_196, %c129] : memref<2x1x512xf32, #tpu.memory_space<vmem>>, vector<1x1x256xf32>
    %441 = vector.shape_cast %440 : vector<1x1x256xf32> to vector<1x256xf32>
    %442 = vector.broadcast %25 : f32 to vector<1x256xf32>
    %443 = arith.mulf %442, %441 : vector<1x256xf32>
    %444 = arith.addf %439, %443 : vector<1x256xf32>
    %c0_197 = arith.constant 0 : index
    %c0_198 = arith.constant 0 : index
    %c145 = arith.constant 145 : index
    %445 = vector.load %arg6[%c0_197, %c0_198, %c145] : memref<2x1x512xf32, #tpu.memory_space<vmem>>, vector<1x1x256xf32>
    %446 = vector.shape_cast %445 : vector<1x1x256xf32> to vector<1x256xf32>
    %447 = vector.broadcast %32 : f32 to vector<1x256xf32>
    %448 = arith.mulf %447, %446 : vector<1x256xf32>
    %449 = arith.addf %444, %448 : vector<1x256xf32>
    %c0_199 = arith.constant 0 : index
    %c0_200 = arith.constant 0 : index
    %c161 = arith.constant 161 : index
    %450 = vector.load %arg6[%c0_199, %c0_200, %c161] : memref<2x1x512xf32, #tpu.memory_space<vmem>>, vector<1x1x256xf32>
    %451 = vector.shape_cast %450 : vector<1x1x256xf32> to vector<1x256xf32>
    %452 = vector.broadcast %39 : f32 to vector<1x256xf32>
    %453 = arith.mulf %452, %451 : vector<1x256xf32>
    %454 = arith.addf %449, %453 : vector<1x256xf32>
    %c0_201 = arith.constant 0 : index
    %c0_202 = arith.constant 0 : index
    %c177 = arith.constant 177 : index
    %455 = vector.load %arg6[%c0_201, %c0_202, %c177] : memref<2x1x512xf32, #tpu.memory_space<vmem>>, vector<1x1x256xf32>
    %456 = vector.shape_cast %455 : vector<1x1x256xf32> to vector<1x256xf32>
    %457 = vector.broadcast %46 : f32 to vector<1x256xf32>
    %458 = arith.mulf %457, %456 : vector<1x256xf32>
    %459 = arith.addf %454, %458 : vector<1x256xf32>
    %460 = arith.mulf %423, %459 : vector<1x256xf32>
    %461 = arith.addf %422, %460 : vector<1x256xf32>
    %cst_203 = arith.constant 0.000000e+00 : f32
    %462 = vector.broadcast %cst_203 : f32 to vector<1x256xf32>
    %c1_204 = arith.constant 1 : index
    %c0_205 = arith.constant 0 : index
    %c81_206 = arith.constant 81 : index
    %463 = vector.load %arg6[%c1_204, %c0_205, %c81_206] : memref<2x1x512xf32, #tpu.memory_space<vmem>>, vector<1x1x256xf32>
    %464 = vector.shape_cast %463 : vector<1x1x256xf32> to vector<1x256xf32>
    %465 = vector.broadcast %53 : f32 to vector<1x256xf32>
    %466 = arith.mulf %465, %464 : vector<1x256xf32>
    %467 = arith.addf %462, %466 : vector<1x256xf32>
    %c1_207 = arith.constant 1 : index
    %c0_208 = arith.constant 0 : index
    %c97_209 = arith.constant 97 : index
    %468 = vector.load %arg6[%c1_207, %c0_208, %c97_209] : memref<2x1x512xf32, #tpu.memory_space<vmem>>, vector<1x1x256xf32>
    %469 = vector.shape_cast %468 : vector<1x1x256xf32> to vector<1x256xf32>
    %470 = vector.broadcast %60 : f32 to vector<1x256xf32>
    %471 = arith.mulf %470, %469 : vector<1x256xf32>
    %472 = arith.addf %467, %471 : vector<1x256xf32>
    %c1_210 = arith.constant 1 : index
    %c0_211 = arith.constant 0 : index
    %c113_212 = arith.constant 113 : index
    %473 = vector.load %arg6[%c1_210, %c0_211, %c113_212] : memref<2x1x512xf32, #tpu.memory_space<vmem>>, vector<1x1x256xf32>
    %474 = vector.shape_cast %473 : vector<1x1x256xf32> to vector<1x256xf32>
    %475 = vector.broadcast %67 : f32 to vector<1x256xf32>
    %476 = arith.mulf %475, %474 : vector<1x256xf32>
    %477 = arith.addf %472, %476 : vector<1x256xf32>
    %c1_213 = arith.constant 1 : index
    %c0_214 = arith.constant 0 : index
    %c129_215 = arith.constant 129 : index
    %478 = vector.load %arg6[%c1_213, %c0_214, %c129_215] : memref<2x1x512xf32, #tpu.memory_space<vmem>>, vector<1x1x256xf32>
    %479 = vector.shape_cast %478 : vector<1x1x256xf32> to vector<1x256xf32>
    %480 = vector.broadcast %74 : f32 to vector<1x256xf32>
    %481 = arith.mulf %480, %479 : vector<1x256xf32>
    %482 = arith.addf %477, %481 : vector<1x256xf32>
    %c1_216 = arith.constant 1 : index
    %c0_217 = arith.constant 0 : index
    %c145_218 = arith.constant 145 : index
    %483 = vector.load %arg6[%c1_216, %c0_217, %c145_218] : memref<2x1x512xf32, #tpu.memory_space<vmem>>, vector<1x1x256xf32>
    %484 = vector.shape_cast %483 : vector<1x1x256xf32> to vector<1x256xf32>
    %485 = vector.broadcast %81 : f32 to vector<1x256xf32>
    %486 = arith.mulf %485, %484 : vector<1x256xf32>
    %487 = arith.addf %482, %486 : vector<1x256xf32>
    %c1_219 = arith.constant 1 : index
    %c0_220 = arith.constant 0 : index
    %c161_221 = arith.constant 161 : index
    %488 = vector.load %arg6[%c1_219, %c0_220, %c161_221] : memref<2x1x512xf32, #tpu.memory_space<vmem>>, vector<1x1x256xf32>
    %489 = vector.shape_cast %488 : vector<1x1x256xf32> to vector<1x256xf32>
    %490 = vector.broadcast %88 : f32 to vector<1x256xf32>
    %491 = arith.mulf %490, %489 : vector<1x256xf32>
    %492 = arith.addf %487, %491 : vector<1x256xf32>
    %c1_222 = arith.constant 1 : index
    %c0_223 = arith.constant 0 : index
    %c177_224 = arith.constant 177 : index
    %493 = vector.load %arg6[%c1_222, %c0_223, %c177_224] : memref<2x1x512xf32, #tpu.memory_space<vmem>>, vector<1x1x256xf32>
    %494 = vector.shape_cast %493 : vector<1x1x256xf32> to vector<1x256xf32>
    %495 = vector.broadcast %95 : f32 to vector<1x256xf32>
    %496 = arith.mulf %495, %494 : vector<1x256xf32>
    %497 = arith.addf %492, %496 : vector<1x256xf32>
    %498 = arith.mulf %423, %497 : vector<1x256xf32>
    %499 = arith.addf %461, %498 : vector<1x256xf32>
    %c5_225 = arith.constant 5 : index
    %c0_226 = arith.constant 0 : index
    %500 = vector.load %arg3[%c5_225, %c0_226] : memref<7x256xf32, #tpu.memory_space<vmem>>, vector<1x256xf32>
    %cst_227 = arith.constant 0.000000e+00 : f32
    %501 = vector.broadcast %cst_227 : f32 to vector<1x256xf32>
    %c0_228 = arith.constant 0 : index
    %c0_229 = arith.constant 0 : index
    %c82_230 = arith.constant 82 : index
    %502 = vector.load %arg6[%c0_228, %c0_229, %c82_230] : memref<2x1x512xf32, #tpu.memory_space<vmem>>, vector<1x1x256xf32>
    %503 = vector.shape_cast %502 : vector<1x1x256xf32> to vector<1x256xf32>
    %504 = vector.broadcast %5 : f32 to vector<1x256xf32>
    %505 = arith.mulf %504, %503 : vector<1x256xf32>
    %506 = arith.addf %501, %505 : vector<1x256xf32>
    %c0_231 = arith.constant 0 : index
    %c0_232 = arith.constant 0 : index
    %c98 = arith.constant 98 : index
    %507 = vector.load %arg6[%c0_231, %c0_232, %c98] : memref<2x1x512xf32, #tpu.memory_space<vmem>>, vector<1x1x256xf32>
    %508 = vector.shape_cast %507 : vector<1x1x256xf32> to vector<1x256xf32>
    %509 = vector.broadcast %12 : f32 to vector<1x256xf32>
    %510 = arith.mulf %509, %508 : vector<1x256xf32>
    %511 = arith.addf %506, %510 : vector<1x256xf32>
    %c0_233 = arith.constant 0 : index
    %c0_234 = arith.constant 0 : index
    %c114 = arith.constant 114 : index
    %512 = vector.load %arg6[%c0_233, %c0_234, %c114] : memref<2x1x512xf32, #tpu.memory_space<vmem>>, vector<1x1x256xf32>
    %513 = vector.shape_cast %512 : vector<1x1x256xf32> to vector<1x256xf32>
    %514 = vector.broadcast %19 : f32 to vector<1x256xf32>
    %515 = arith.mulf %514, %513 : vector<1x256xf32>
    %516 = arith.addf %511, %515 : vector<1x256xf32>
    %c0_235 = arith.constant 0 : index
    %c0_236 = arith.constant 0 : index
    %c130 = arith.constant 130 : index
    %517 = vector.load %arg6[%c0_235, %c0_236, %c130] : memref<2x1x512xf32, #tpu.memory_space<vmem>>, vector<1x1x256xf32>
    %518 = vector.shape_cast %517 : vector<1x1x256xf32> to vector<1x256xf32>
    %519 = vector.broadcast %26 : f32 to vector<1x256xf32>
    %520 = arith.mulf %519, %518 : vector<1x256xf32>
    %521 = arith.addf %516, %520 : vector<1x256xf32>
    %c0_237 = arith.constant 0 : index
    %c0_238 = arith.constant 0 : index
    %c146 = arith.constant 146 : index
    %522 = vector.load %arg6[%c0_237, %c0_238, %c146] : memref<2x1x512xf32, #tpu.memory_space<vmem>>, vector<1x1x256xf32>
    %523 = vector.shape_cast %522 : vector<1x1x256xf32> to vector<1x256xf32>
    %524 = vector.broadcast %33 : f32 to vector<1x256xf32>
    %525 = arith.mulf %524, %523 : vector<1x256xf32>
    %526 = arith.addf %521, %525 : vector<1x256xf32>
    %c0_239 = arith.constant 0 : index
    %c0_240 = arith.constant 0 : index
    %c162 = arith.constant 162 : index
    %527 = vector.load %arg6[%c0_239, %c0_240, %c162] : memref<2x1x512xf32, #tpu.memory_space<vmem>>, vector<1x1x256xf32>
    %528 = vector.shape_cast %527 : vector<1x1x256xf32> to vector<1x256xf32>
    %529 = vector.broadcast %40 : f32 to vector<1x256xf32>
    %530 = arith.mulf %529, %528 : vector<1x256xf32>
    %531 = arith.addf %526, %530 : vector<1x256xf32>
    %c0_241 = arith.constant 0 : index
    %c0_242 = arith.constant 0 : index
    %c178 = arith.constant 178 : index
    %532 = vector.load %arg6[%c0_241, %c0_242, %c178] : memref<2x1x512xf32, #tpu.memory_space<vmem>>, vector<1x1x256xf32>
    %533 = vector.shape_cast %532 : vector<1x1x256xf32> to vector<1x256xf32>
    %534 = vector.broadcast %47 : f32 to vector<1x256xf32>
    %535 = arith.mulf %534, %533 : vector<1x256xf32>
    %536 = arith.addf %531, %535 : vector<1x256xf32>
    %537 = arith.mulf %500, %536 : vector<1x256xf32>
    %538 = arith.addf %499, %537 : vector<1x256xf32>
    %cst_243 = arith.constant 0.000000e+00 : f32
    %539 = vector.broadcast %cst_243 : f32 to vector<1x256xf32>
    %c1_244 = arith.constant 1 : index
    %c0_245 = arith.constant 0 : index
    %c82_246 = arith.constant 82 : index
    %540 = vector.load %arg6[%c1_244, %c0_245, %c82_246] : memref<2x1x512xf32, #tpu.memory_space<vmem>>, vector<1x1x256xf32>
    %541 = vector.shape_cast %540 : vector<1x1x256xf32> to vector<1x256xf32>
    %542 = vector.broadcast %54 : f32 to vector<1x256xf32>
    %543 = arith.mulf %542, %541 : vector<1x256xf32>
    %544 = arith.addf %539, %543 : vector<1x256xf32>
    %c1_247 = arith.constant 1 : index
    %c0_248 = arith.constant 0 : index
    %c98_249 = arith.constant 98 : index
    %545 = vector.load %arg6[%c1_247, %c0_248, %c98_249] : memref<2x1x512xf32, #tpu.memory_space<vmem>>, vector<1x1x256xf32>
    %546 = vector.shape_cast %545 : vector<1x1x256xf32> to vector<1x256xf32>
    %547 = vector.broadcast %61 : f32 to vector<1x256xf32>
    %548 = arith.mulf %547, %546 : vector<1x256xf32>
    %549 = arith.addf %544, %548 : vector<1x256xf32>
    %c1_250 = arith.constant 1 : index
    %c0_251 = arith.constant 0 : index
    %c114_252 = arith.constant 114 : index
    %550 = vector.load %arg6[%c1_250, %c0_251, %c114_252] : memref<2x1x512xf32, #tpu.memory_space<vmem>>, vector<1x1x256xf32>
    %551 = vector.shape_cast %550 : vector<1x1x256xf32> to vector<1x256xf32>
    %552 = vector.broadcast %68 : f32 to vector<1x256xf32>
    %553 = arith.mulf %552, %551 : vector<1x256xf32>
    %554 = arith.addf %549, %553 : vector<1x256xf32>
    %c1_253 = arith.constant 1 : index
    %c0_254 = arith.constant 0 : index
    %c130_255 = arith.constant 130 : index
    %555 = vector.load %arg6[%c1_253, %c0_254, %c130_255] : memref<2x1x512xf32, #tpu.memory_space<vmem>>, vector<1x1x256xf32>
    %556 = vector.shape_cast %555 : vector<1x1x256xf32> to vector<1x256xf32>
    %557 = vector.broadcast %75 : f32 to vector<1x256xf32>
    %558 = arith.mulf %557, %556 : vector<1x256xf32>
    %559 = arith.addf %554, %558 : vector<1x256xf32>
    %c1_256 = arith.constant 1 : index
    %c0_257 = arith.constant 0 : index
    %c146_258 = arith.constant 146 : index
    %560 = vector.load %arg6[%c1_256, %c0_257, %c146_258] : memref<2x1x512xf32, #tpu.memory_space<vmem>>, vector<1x1x256xf32>
    %561 = vector.shape_cast %560 : vector<1x1x256xf32> to vector<1x256xf32>
    %562 = vector.broadcast %82 : f32 to vector<1x256xf32>
    %563 = arith.mulf %562, %561 : vector<1x256xf32>
    %564 = arith.addf %559, %563 : vector<1x256xf32>
    %c1_259 = arith.constant 1 : index
    %c0_260 = arith.constant 0 : index
    %c162_261 = arith.constant 162 : index
    %565 = vector.load %arg6[%c1_259, %c0_260, %c162_261] : memref<2x1x512xf32, #tpu.memory_space<vmem>>, vector<1x1x256xf32>
    %566 = vector.shape_cast %565 : vector<1x1x256xf32> to vector<1x256xf32>
    %567 = vector.broadcast %89 : f32 to vector<1x256xf32>
    %568 = arith.mulf %567, %566 : vector<1x256xf32>
    %569 = arith.addf %564, %568 : vector<1x256xf32>
    %c1_262 = arith.constant 1 : index
    %c0_263 = arith.constant 0 : index
    %c178_264 = arith.constant 178 : index
    %570 = vector.load %arg6[%c1_262, %c0_263, %c178_264] : memref<2x1x512xf32, #tpu.memory_space<vmem>>, vector<1x1x256xf32>
    %571 = vector.shape_cast %570 : vector<1x1x256xf32> to vector<1x256xf32>
    %572 = vector.broadcast %96 : f32 to vector<1x256xf32>
    %573 = arith.mulf %572, %571 : vector<1x256xf32>
    %574 = arith.addf %569, %573 : vector<1x256xf32>
    %575 = arith.mulf %500, %574 : vector<1x256xf32>
    %576 = arith.addf %538, %575 : vector<1x256xf32>
    %c6_265 = arith.constant 6 : index
    %c0_266 = arith.constant 0 : index
    %577 = vector.load %arg3[%c6_265, %c0_266] : memref<7x256xf32, #tpu.memory_space<vmem>>, vector<1x256xf32>
    %cst_267 = arith.constant 0.000000e+00 : f32
    %578 = vector.broadcast %cst_267 : f32 to vector<1x256xf32>
    %c0_268 = arith.constant 0 : index
    %c0_269 = arith.constant 0 : index
    %c83_270 = arith.constant 83 : index
    %579 = vector.load %arg6[%c0_268, %c0_269, %c83_270] : memref<2x1x512xf32, #tpu.memory_space<vmem>>, vector<1x1x256xf32>
    %580 = vector.shape_cast %579 : vector<1x1x256xf32> to vector<1x256xf32>
    %581 = vector.broadcast %6 : f32 to vector<1x256xf32>
    %582 = arith.mulf %581, %580 : vector<1x256xf32>
    %583 = arith.addf %578, %582 : vector<1x256xf32>
    %c0_271 = arith.constant 0 : index
    %c0_272 = arith.constant 0 : index
    %c99 = arith.constant 99 : index
    %584 = vector.load %arg6[%c0_271, %c0_272, %c99] : memref<2x1x512xf32, #tpu.memory_space<vmem>>, vector<1x1x256xf32>
    %585 = vector.shape_cast %584 : vector<1x1x256xf32> to vector<1x256xf32>
    %586 = vector.broadcast %13 : f32 to vector<1x256xf32>
    %587 = arith.mulf %586, %585 : vector<1x256xf32>
    %588 = arith.addf %583, %587 : vector<1x256xf32>
    %c0_273 = arith.constant 0 : index
    %c0_274 = arith.constant 0 : index
    %c115 = arith.constant 115 : index
    %589 = vector.load %arg6[%c0_273, %c0_274, %c115] : memref<2x1x512xf32, #tpu.memory_space<vmem>>, vector<1x1x256xf32>
    %590 = vector.shape_cast %589 : vector<1x1x256xf32> to vector<1x256xf32>
    %591 = vector.broadcast %20 : f32 to vector<1x256xf32>
    %592 = arith.mulf %591, %590 : vector<1x256xf32>
    %593 = arith.addf %588, %592 : vector<1x256xf32>
    %c0_275 = arith.constant 0 : index
    %c0_276 = arith.constant 0 : index
    %c131 = arith.constant 131 : index
    %594 = vector.load %arg6[%c0_275, %c0_276, %c131] : memref<2x1x512xf32, #tpu.memory_space<vmem>>, vector<1x1x256xf32>
    %595 = vector.shape_cast %594 : vector<1x1x256xf32> to vector<1x256xf32>
    %596 = vector.broadcast %27 : f32 to vector<1x256xf32>
    %597 = arith.mulf %596, %595 : vector<1x256xf32>
    %598 = arith.addf %593, %597 : vector<1x256xf32>
    %c0_277 = arith.constant 0 : index
    %c0_278 = arith.constant 0 : index
    %c147 = arith.constant 147 : index
    %599 = vector.load %arg6[%c0_277, %c0_278, %c147] : memref<2x1x512xf32, #tpu.memory_space<vmem>>, vector<1x1x256xf32>
    %600 = vector.shape_cast %599 : vector<1x1x256xf32> to vector<1x256xf32>
    %601 = vector.broadcast %34 : f32 to vector<1x256xf32>
    %602 = arith.mulf %601, %600 : vector<1x256xf32>
    %603 = arith.addf %598, %602 : vector<1x256xf32>
    %c0_279 = arith.constant 0 : index
    %c0_280 = arith.constant 0 : index
    %c163 = arith.constant 163 : index
    %604 = vector.load %arg6[%c0_279, %c0_280, %c163] : memref<2x1x512xf32, #tpu.memory_space<vmem>>, vector<1x1x256xf32>
    %605 = vector.shape_cast %604 : vector<1x1x256xf32> to vector<1x256xf32>
    %606 = vector.broadcast %41 : f32 to vector<1x256xf32>
    %607 = arith.mulf %606, %605 : vector<1x256xf32>
    %608 = arith.addf %603, %607 : vector<1x256xf32>
    %c0_281 = arith.constant 0 : index
    %c0_282 = arith.constant 0 : index
    %c179 = arith.constant 179 : index
    %609 = vector.load %arg6[%c0_281, %c0_282, %c179] : memref<2x1x512xf32, #tpu.memory_space<vmem>>, vector<1x1x256xf32>
    %610 = vector.shape_cast %609 : vector<1x1x256xf32> to vector<1x256xf32>
    %611 = vector.broadcast %48 : f32 to vector<1x256xf32>
    %612 = arith.mulf %611, %610 : vector<1x256xf32>
    %613 = arith.addf %608, %612 : vector<1x256xf32>
    %614 = arith.mulf %577, %613 : vector<1x256xf32>
    %615 = arith.addf %576, %614 : vector<1x256xf32>
    %cst_283 = arith.constant 0.000000e+00 : f32
    %616 = vector.broadcast %cst_283 : f32 to vector<1x256xf32>
    %c1_284 = arith.constant 1 : index
    %c0_285 = arith.constant 0 : index
    %c83_286 = arith.constant 83 : index
    %617 = vector.load %arg6[%c1_284, %c0_285, %c83_286] : memref<2x1x512xf32, #tpu.memory_space<vmem>>, vector<1x1x256xf32>
    %618 = vector.shape_cast %617 : vector<1x1x256xf32> to vector<1x256xf32>
    %619 = vector.broadcast %55 : f32 to vector<1x256xf32>
    %620 = arith.mulf %619, %618 : vector<1x256xf32>
    %621 = arith.addf %616, %620 : vector<1x256xf32>
    %c1_287 = arith.constant 1 : index
    %c0_288 = arith.constant 0 : index
    %c99_289 = arith.constant 99 : index
    %622 = vector.load %arg6[%c1_287, %c0_288, %c99_289] : memref<2x1x512xf32, #tpu.memory_space<vmem>>, vector<1x1x256xf32>
    %623 = vector.shape_cast %622 : vector<1x1x256xf32> to vector<1x256xf32>
    %624 = vector.broadcast %62 : f32 to vector<1x256xf32>
    %625 = arith.mulf %624, %623 : vector<1x256xf32>
    %626 = arith.addf %621, %625 : vector<1x256xf32>
    %c1_290 = arith.constant 1 : index
    %c0_291 = arith.constant 0 : index
    %c115_292 = arith.constant 115 : index
    %627 = vector.load %arg6[%c1_290, %c0_291, %c115_292] : memref<2x1x512xf32, #tpu.memory_space<vmem>>, vector<1x1x256xf32>
    %628 = vector.shape_cast %627 : vector<1x1x256xf32> to vector<1x256xf32>
    %629 = vector.broadcast %69 : f32 to vector<1x256xf32>
    %630 = arith.mulf %629, %628 : vector<1x256xf32>
    %631 = arith.addf %626, %630 : vector<1x256xf32>
    %c1_293 = arith.constant 1 : index
    %c0_294 = arith.constant 0 : index
    %c131_295 = arith.constant 131 : index
    %632 = vector.load %arg6[%c1_293, %c0_294, %c131_295] : memref<2x1x512xf32, #tpu.memory_space<vmem>>, vector<1x1x256xf32>
    %633 = vector.shape_cast %632 : vector<1x1x256xf32> to vector<1x256xf32>
    %634 = vector.broadcast %76 : f32 to vector<1x256xf32>
    %635 = arith.mulf %634, %633 : vector<1x256xf32>
    %636 = arith.addf %631, %635 : vector<1x256xf32>
    %c1_296 = arith.constant 1 : index
    %c0_297 = arith.constant 0 : index
    %c147_298 = arith.constant 147 : index
    %637 = vector.load %arg6[%c1_296, %c0_297, %c147_298] : memref<2x1x512xf32, #tpu.memory_space<vmem>>, vector<1x1x256xf32>
    %638 = vector.shape_cast %637 : vector<1x1x256xf32> to vector<1x256xf32>
    %639 = vector.broadcast %83 : f32 to vector<1x256xf32>
    %640 = arith.mulf %639, %638 : vector<1x256xf32>
    %641 = arith.addf %636, %640 : vector<1x256xf32>
    %c1_299 = arith.constant 1 : index
    %c0_300 = arith.constant 0 : index
    %c163_301 = arith.constant 163 : index
    %642 = vector.load %arg6[%c1_299, %c0_300, %c163_301] : memref<2x1x512xf32, #tpu.memory_space<vmem>>, vector<1x1x256xf32>
    %643 = vector.shape_cast %642 : vector<1x1x256xf32> to vector<1x256xf32>
    %644 = vector.broadcast %90 : f32 to vector<1x256xf32>
    %645 = arith.mulf %644, %643 : vector<1x256xf32>
    %646 = arith.addf %641, %645 : vector<1x256xf32>
    %c1_302 = arith.constant 1 : index
    %c0_303 = arith.constant 0 : index
    %c179_304 = arith.constant 179 : index
    %647 = vector.load %arg6[%c1_302, %c0_303, %c179_304] : memref<2x1x512xf32, #tpu.memory_space<vmem>>, vector<1x1x256xf32>
    %648 = vector.shape_cast %647 : vector<1x1x256xf32> to vector<1x256xf32>
    %649 = vector.broadcast %97 : f32 to vector<1x256xf32>
    %650 = arith.mulf %649, %648 : vector<1x256xf32>
    %651 = arith.addf %646, %650 : vector<1x256xf32>
    %652 = arith.mulf %577, %651 : vector<1x256xf32>
    %653 = arith.addf %615, %652 : vector<1x256xf32>
    %654 = vector.broadcast %98 : f32 to vector<1x256xf32>
    %655 = arith.mulf %653, %654 : vector<1x256xf32>
    %656 = vector.broadcast %99 : f32 to vector<1x256xf32>
    %657 = arith.addf %655, %656 : vector<1x256xf32>
    %658 = arith.negf %657 : vector<1x256xf32>
    %659 = math.exp %658 : vector<1x256xf32>
    %cst_305 = arith.constant 1.000000e+00 : f32
    %660 = vector.broadcast %cst_305 : f32 to vector<1x256xf32>
    %661 = arith.addf %660, %659 : vector<1x256xf32>
    %662 = arith.divf %660, %661 : vector<1x256xf32>
    %c0_306 = arith.constant 0 : index
    %c0_307 = arith.constant 0 : index
    %c0_308 = arith.constant 0 : index
    %663 = vector.load %arg4[%c0_306, %c0_307, %c0_308] : memref<1x4x256xf32, #tpu.memory_space<vmem>>, vector<1x4x256xf32>
    %664 = vector.shape_cast %662 : vector<1x256xf32> to vector<1x1x256xf32>
    %665 = vector.broadcast %664 : vector<1x1x256xf32> to vector<1x4x256xf32>
    %666 = arith.mulf %663, %665 : vector<1x4x256xf32>
    %c0_309 = arith.constant 0 : index
    %c0_310 = arith.constant 0 : index
    %c0_311 = arith.constant 0 : index
    %667 = vector.load %arg5[%c0_309, %c0_310, %c0_311] : memref<1x4x256xf32, #tpu.memory_space<vmem>>, vector<1x4x256xf32>
    tpu.vector_store %arg5[%c0_309, %c0_310, %c0_311], %666 {strides = array<i32>} : memref<1x4x256xf32, #tpu.memory_space<vmem>>, vector<1x4x256xf32>,
    return
  }
  func.func @transform_0(%arg0: i32) -> i32 {
    %c0_i32 = arith.constant 0 : i32
    %c0_i32_0 = arith.constant 0 : i32
    return %c0_i32 : i32
  }
  func.func @transform_1(%arg0: i32) -> i32 {
    %c0_i32 = arith.constant 0 : i32
    %c0_i32_0 = arith.constant 0 : i32
    return %c0_i32 : i32
  }
  func.func @transform_2(%arg0: i32) -> (i32, i32) {
    %c0_i32 = arith.constant 0 : i32
    %c0_i32_0 = arith.constant 0 : i32
    %c0_i32_1 = arith.constant 0 : i32
    return %c0_i32, %c0_i32_0 : i32, i32
  }
  func.func @transform_3(%arg0: i32) -> (i32, i32, i32) {
    %c0_i32 = arith.constant 0 : i32
    %c0_i32_0 = arith.constant 0 : i32
    %c0_i32_1 = arith.constant 0 : i32
    return %arg0, %c0_i32, %c0_i32_0 : i32, i32, i32
  }
  func.func @transform_4(%arg0: i32) -> (i32, i32, i32) {
    %c0_i32 = arith.constant 0 : i32
    %c0_i32_0 = arith.constant 0 : i32
    %c0_i32_1 = arith.constant 0 : i32
    return %arg0, %c0_i32, %c0_i32_0 : i32, i32, i32
  }
}

</mosaic_0001>

<bundles_post_ra>
// kernel: tpu_custom_call.1
= control target key start
LH: loop header
LB: loop body
LE: loop exit
PB: predicated region body
PF: predicated region fallthrough
CT: control target
= control target key end

     0   :  { %9 = vsyncpa [#allocation6], 0  ;;  %s2577_s0 = inlined_call_operand.hbm [shape: f32[98], index: 0, kind: input, shape index: {}]   ;;  %s2578_s1 = inlined_call_operand.hbm [shape: f32[2], index: 1, kind: input, shape index: {}]   ;;  %s2579_s2 = inlined_call_operand.hbm [shape: f32[7,256], index: 2, kind: input, shape index: {}]   ;;  %s2580_s3 = inlined_call_operand.hbm [shape: f32[2,4,256], index: 3, kind: input, shape index: {}]   ;;  %s2581_s4 = inlined_call_operand.hbm [shape: f32[2,4,256], index: 4, kind: output, shape index: {}]  }
   0x1   :  { %10 = vsyncpa [#allocation8], 0 }
   0x2   :  { %11 = vsyncpa [#allocation4], 0 }
   0x3   :  { %12 = vsyncpa [#allocation11], 0 }
   0x4   :  { %14 = vsyncpa [#allocation11 + $0x1], 0 }
   0x5   :  { %15 = vsyncpa [#allocation5], 0 }
   0x6   :  { %17 = vsyncpa [#allocation5 + $0x1], 0  ;;  %s1960_s15 = smov 0   ;;  %s1962_s16 = smov 0  }
   0x7   :  { %s1964_s17 = smov 0   ;;  %s1966_s18 = smov 0  }
   0x8 LB: > { %s1981_s19 = sadd.s32 4294967295, %s1916_s18   ;;  %s1526_s20 = sadd.s32 4294967294, %s1916_s18   ;;  %s1916_s18 = sphi %s1966_s18, %s2593_s18   ;;  %s1912_s17 = sphi %s1964_s17, %s2592_s17   ;;  %s1908_s16 = sphi %s1962_s16, %s2591_s16   ;;  %s1904_s15 = sphi %s1960_s15, %s2590_s15  }
   0x9   : > { %p106_p0 = scmp.ne.s32.totalorder %s1908_s16, %s1904_s15  ;;  %p107_p1 = scmp.eq.s32.totalorder %s1981_s19, 0 }
   0xa   : > { %p130_p2 = scmp.eq.s32.totalorder %s1981_s19, 1  ;;  %p136_p3 = scmp.eq.s32.totalorder %s1526_s20, 1 }
   0xb   : > { %p1990_p4 = por %p107_p1, %p106_p0  ;;  %p1527_p5 = scmp.ge.s32.totalorder %s1916_s18, 1 }
   0xc   : > { %p1995_p6 = por %p136_p3, %p106_p0  ;;  %p143_p7 = scmp.lt.s32.totalorder %s1916_s18, 3 }
   0xd   : > { %s155_s25 = sshll.u32 %s2577_s0, 4  ;;  %s165_s29 = sshll.u32 %s2578_s1, 4  ;;  %s156_s25 = int_to_ptr.hbm [resolvable:$true] %s155_s25  ;;  %s166_s29 = int_to_ptr.hbm [resolvable:$true] %s165_s29 }
   0xe   : > { %p2003_p8 = pnand %p1527_p5, %p143_p7  ;;  %s175_s6 = sshll.u32 %s2579_s2, 4  ;;  %s176_s6 = int_to_ptr.hbm [resolvable:$true] %s175_s6 }
   0xf   : > { %s1918_s7 = smov [#allocation9]   ;;  %s1919_s9 = smov [#allocation3]  }
  0x10   : > { %p1663_p10 = pneg %p2003_p8  ;;  %s177_s8 = sshll.u32 %s1918_s7, 4  ;;  %s178_s8 = int_to_ptr.vmem [resolvable:$true] %s177_s8 }
  0x11   : > { %s1920_s10 = smov [#allocation7]   ;;  %s2019_s11 = sadd.s32 1, %s1916_s18  }
  0x12   : > { %p1664_p11 = pnand %p1663_p10, %p107_p1  ;;  %s90_s12 = ssub.s32 %s1916_s18, %s2019_s11 }
  0x13   : > { %s93_s13 = sadd.s32 1, %s1912_s17  ;;  %p91_p12 = scmp.eq.s32.totalorder %s90_s12, 0 }
  0x14   : > { %1666 = dma.hbm_to_smem (!%p1664_p11), %s156_s25, 16, %s1919_s9, [#allocation6]  }
  0x15   : > { %1669 = dma.hbm_to_smem (!%p1664_p11), %s166_s29, 16, %s1920_s10, [#allocation8]  }
  0x16   : > { %1672 = dma.hbm_to_vmem [thread:$0]  (!%p1664_p11), %s176_s6, 256, %s178_s8, [#allocation4]  }
  0x17   : > { %p100_p13 = scmp.ne.s32.totalorder %s1912_s17, %s1908_s16  ;;  %p101_p0 = scmp.eq.s32.totalorder %s1916_s18, 0 }
  0x18   : > { %s2028_s14 = scalar_select %p91_p12, %s1912_s17, %s93_s13  }
  0x19   : > { %p2032_p3 = por %p130_p2, %p100_p13  ;;  %p1684_p5 = scmp.lt.s32.totalorder %s1916_s18, 2 }
  0x1a   : > { %s188_s23 = sand.u32 1, %s1912_s17   ;;  %s1645_s24 = sshll.u32 %s1916_s18, 3 }
  0x1b   : > { %p102_p7 = por %p101_p0, %p100_p13  ;;  %s1532_s25 = sshll.u32 %s188_s23, 3 }
  0x1c   : > { %s197_s29 = scalar_lea.hbm %s2580_s3, %s1645_s24  ;;  %s192_s5 = scalar_lea.vmem [#allocation10], %s1532_s25 }
  0x1d   : > { %s199_s30 = sshll.u32 %s197_s29, 4  ;;  %s201_s6 = sshll.u32 %s192_s5, 4  ;;  %s200_s30 = int_to_ptr.hbm [resolvable:$true] %s199_s30  ;;  %s202_s6 = int_to_ptr.vmem [resolvable:$true] %s201_s6 }
  0x1e   : > { %p2042_p10 = pnand %p1684_p5, %p102_p7  ;;  %s189_s8 = scalar_lea.sflag [#allocation11], %s188_s23 }
  0x1f   : > { %s1808_s9 = sshra.s32 %s200_s30, 4  ;;  %s1815_s24 = scalar_lea.hbm %s2580_s3, 16  ;;  %s1809_s9 = int_to_ptr.hbm [resolvable:$true] %s1808_s9 }
  0x20   : > { %s1810_s10 = scalar_lea.hbm %s1809_s9, 8  ;;  %p1812_p11 = pneg %p2042_p10 }
  0x21   : > { %p1811_p2 = scmp.ne.s32.totalorder %s1809_s9, %s1810_s10  ;;  %p1816_p0 = scmp.lt.s32.totalorder %s1809_s9, %s2580_s3 }
  0x22   : > { %p1817_p5 = scmp.lt.s32.totalorder %s1815_s24, %s1810_s10 }
  0x23   : > { %p1813_p12 = pnand %p1812_p11, %p1811_p2 }
  0x24   : > { %p1818_p7 = por %p1817_p5, %p1816_p0 }
  0x25   : > { %p1814_p13 = pneg %p1813_p12 }
  0x27   : > { %p1819_p9 = pnand %p1818_p7, %p1814_p13 }
  0x29   : > { %1822 = shalt.err (!%p1819_p9)
}
  0x2a   : > { %1676 = dma.hbm_to_vmem [thread:$0]  (!%p2042_p10), %s200_s30, 128, %s202_s6, %s189_s8  }
  0x2b   : > { %210 = sbr.rel (%p2003_p8) target bundleno = 649 (0x289), region = 36 }
  0x30   : > { %1883 = dma.done.wait (%p107_p1), [#allocation6], 16  }
  0x31   : > { %1885 = vsyncadd (%p107_p1), [#allocation6], 4294967280 }
  0x32   : > { %1887 = dma.done.wait (%p107_p1), [#allocation8], 16  }
  0x33   : > { %1889 = vsyncadd (%p107_p1), [#allocation8], 4294967280 }
  0x34   : > { %1891 = dma.done.wait (%p107_p1), [#allocation4], 256  }
  0x35   : > { %1893 = vsyncadd (%p107_p1), [#allocation4], 4294967040  ;;  %s2071_s26 = sand.u32 1, %s1908_s16  }
  0x36   : > { %s1539_s23 = sshll.u32 %s2071_s26, 3  ;;  %s228_s28 = scalar_lea.sflag [#allocation11], %s2071_s26 }
  0x37   : > { %s2077_s29 = scalar_lea.vmem [#allocation10], %s1539_s23 }
  0x38   : > { %1895 = dma.done.wait (%p1990_p4), %s228_s28, 128  }
  0x39   : > { %1897 = vsyncadd (%p1990_p4), %s228_s28, 4294967168 }
  0x3a   : > { %237 = sfence }
  0x3b   : > { %v358_v0 = vld [vmem:[%s2077_s29] sm:$0xff]  ;;  %v408_v1 = vlaneseq  ;;  %v1921_v2 = vmov 4.0   ;;  %v1922_v3 = vmov 0.0   ;;  %vm365_vm1 = vcmask 1043456   ;;  %s2088_s21 = sld [smem:[#allocation3 + $0x23]]  ;;  %s1923_s9 = smov 48  }
  0x3c   : > { %360 = vst [vmem:[#allocation1] ss:$2 sm:$0xff] %v358_v0  ;;  %1738 = vrcp.f32 %v1921_v2  ;;  %vm419_vm2 = vcmask 1040384   ;;  %s1561_s30 = sld [smem:[#allocation3 + $0x15]]  ;;  %s1924_s10 = smov 80   ;;  %vm443_vm5 = vcmask 916480  }
  0x3d   : > { %vm410_vm0 = vcmp.lt.s32.totalorder %v408_v1, 128  ;;  %vm2090_vm3 = vcmp.lt.s32.totalorder %v408_v1, 256  ;;  %s1547_s5 = sld [smem:[#allocation3 + $0x7]]  ;;  %s1925_s13 = smov 112   ;;  %vm453_vm6 = vcmask 785408   ;;  %vm463_vm7 = vcmask 654336  }
  0x3e   : > { %414 = vst.msk [vmem:[#allocation2 + $0x3] sm:$0x1] %vm410_vm0, %v1922_v3  ;;  %s1582_s6 = sld [smem:[#allocation3 + $0x2a]]  ;;  %s1926_s27 = smov 32   ;;  %vm474_vm8 = vcmask 523264   ;;  %vm484_vm9 = vcmask 392192  }
  0x3f   : > { %412 = vst.msk [vmem:[#allocation2] sm:$0x1] %vm410_vm0, %v1922_v3  ;;  %s1568_s7 = sld [smem:[#allocation3 + $0x1c]]  ;;  %s1927_s28 = smov 64   ;;  %vm494_vm10 = vcmask 261120   ;;  %vm502_vm11 = vcmask 416768  }
  0x40   : > { %413 = vst.msk [vmem:[#allocation2 + $0x4] sm:$0x1] %vm410_vm0, %v1922_v3  ;;  %s1554_s8 = sld [smem:[#allocation3 + $0xe]]  ;;  %vm637_vm12 = vcmask 408576   ;;  %vm770_vm13 = vcmask 400384   ;;  %vm1037_vm14 = vcmask 384000  }
  0x41   : > { %415 = vst.msk [vmem:[#allocation2 + $0x7] sm:$0x1] %vm410_vm0, %v1922_v3  ;;  %v478_v45 = vstv %s2088_s21  ;;  %s1562_s12 = sld [smem:[#allocation3 + $0x16]]  ;;  %vm1170_vm15 = vcmask 375808   ;;  %vm1303_vm0 = vcmask 367616  }
  0x42   : > { %v1739_v4 = vpop.eup %1738  ;;  %v457_v48 = vstv %s1561_s30  ;;  %s1548_s24 = sld [smem:[#allocation3 + $0x8]]  ;;  %s1928_s30 = smov 96  }
  0x43   : > { %v361_v5 = vld.sshfl [vmem:[#allocation1] sm:$0xff pattern:$0x75316420]  ;;  %v362_v6 = vld.sshfl [vmem:[#allocation1 + $0x8] sm:$0xff pattern:$0x75316420]  ;;  %vm404_vm4 = vweird.f32 %v1739_v4  ;;  %v437_v49 = vstv %s1547_s5 }
  0x44   : > { %v366_v7 = vsel %vm365_vm1, %v361_v5, -inf  ;;  %v373_v8 = vsel %vm365_vm1, %v362_v6, -inf  ;;  %380 = vst [vmem:[#allocation1] ss:$2 sm:$0xff] %v358_v0  ;;  %v400_v11 = vmul.f32 4.0, %v1739_v4  ;;  %v488_v57 = vstv %s1582_s6  ;;  %s1555_s25 = sld [smem:[#allocation3 + $0xf]] }
  0x45   : > { %v367_v9 = vrot.slane %v366_v7, 4  ;;  %v374_v10 = vrot.slane %v373_v8, 4  ;;  %v468_v58 = vstv %s1568_s7  ;;  %s1583_s21 = sld [smem:[#allocation3 + $0x2b]] }
  0x46   : > { %v401_v16 = vsub.f32 1.0, %v400_v11  ;;  %v447_v59 = vstv %s1554_s8  ;;  %s1569_s5 = sld [smem:[#allocation3 + $0x1d]] }
  0x47   : > { %v368_v12 = vmax.f32 %v366_v7, %v367_v9  ;;  %v375_v13 = vmax.f32 %v373_v8, %v374_v10  ;;  %v597_v63 = vstv %s1562_s12  ;;  %s1576_s6 = sld [smem:[#allocation3 + $0x24]] }
  0x48   : > { %v402_v27 = vmul.f32 %v1739_v4, %v401_v16  ;;  %v579_v0 = vstv %s1548_s24  ;;  %s1596_s7 = sld [smem:[#allocation3 + $0x38]] }
  0x49   : > { %v369_v14 = vrot.slane %v368_v12, 2  ;;  %v376_v15 = vrot.slane %v375_v13, 2  ;;  %s1603_s8 = sld [smem:[#allocation3 + $0x3f]] }
  0x4a   : > { %v403_v36 = vadd.f32 %v1739_v4, %v402_v27  ;;  %v588_v1 = vstv %s1555_s25  ;;  %s1610_s12 = sld [smem:[#allocation3 + $0x46]] }
  0x4b   : > { %v370_v17 = vmax.f32 %v368_v12, %v369_v14  ;;  %v377_v18 = vmax.f32 %v375_v13, %v376_v15  ;;  %v381_v19 = vld.sshfl [vmem:[#allocation1] sm:$0xff pattern:$0x75316420]  ;;  %v382_v20 = vld.sshfl [vmem:[#allocation1 + $0x8] sm:$0xff pattern:$0x75316420]  ;;  %v624_v5 = vstv %s1583_s21 }
  0x4c   : > { %v385_v21 = vsel %vm365_vm1, %v381_v19, 0.0  ;;  %v392_v22 = vsel %vm365_vm1, %v382_v20, 0.0  ;;  %v405_v42 = vsel %vm404_vm4, %v1739_v4, %v403_v36  ;;  %v606_v6 = vstv %s1569_s5  ;;  %s1617_s24 = sld [smem:[#allocation3 + $0x4d]] }
  0x4d   : > { %v371_v23 = vrot.slane %v370_v17, 1  ;;  %v378_v24 = vrot.slane %v377_v18, 1  ;;  %v386_v25 = vrot.slane %v385_v21, 4  ;;  %v393_v26 = vrot.slane %v392_v22, 4  ;;  %s1624_s25 = sld [smem:[#allocation3 + $0x54]] }
  0x4e   : > { %v615_v7 = vstv %s1576_s6  ;;  %v511_v12 = vstv %s1596_s7  ;;  %s1631_s21 = sld [smem:[#allocation3 + $0x5b]] }
  0x4f   : > { %v372_v28 = vmax.f32 %v370_v17, %v371_v23  ;;  %v379_v29 = vmax.f32 %v377_v18, %v378_v24  ;;  %v387_v30 = vadd.f32 %v386_v25, %v385_v21  ;;  %v394_v31 = vadd.f32 %v393_v26, %v392_v22  ;;  %s1604_s5 = sld [smem:[#allocation3 + $0x40]] }
  0x50   : > { %v520_v13 = vstv %s1603_s8  ;;  %v529_v14 = vstv %s1610_s12  ;;  %s1611_s6 = sld [smem:[#allocation3 + $0x47]] }
  0x51   : > { %v388_v32 = vrot.slane %v387_v30, 2  ;;  %v395_v33 = vrot.slane %v394_v31, 2  ;;  %v418_v34 = vrot.slane %v379_v29, 7  ;;  %s1597_s7 = sld [smem:[#allocation3 + $0x39]] }
  0x52   : > { %v539_v19 = vstv %s1617_s24  ;;  %s1625_s8 = sld [smem:[#allocation3 + $0x55]] }
  0x53   : > { %v389_v37 = vadd.f32 %v388_v32, %v387_v30  ;;  %v396_v38 = vadd.f32 %v395_v33, %v394_v31  ;;  %v420_v39 = vsel %vm419_vm2, %v372_v28, %v418_v34  ;;  %v548_v20 = vstv %s1624_s25  ;;  %s1632_s12 = sld [smem:[#allocation3 + $0x5c]] }
  0x54   : > { %424 = vst.msk [vmem:[#allocation2 + $0x1] sm:$0x3] %vm2090_vm3, %v420_v39  ;;  %v557_v21 = vstv %s1631_s21  ;;  %s1618_s24 = sld [smem:[#allocation3 + $0x4e]] }
  0x55   : > { %v390_v40 = vrot.slane %v389_v37, 1  ;;  %v397_v41 = vrot.slane %v396_v38, 1  ;;  %v654_v25 = vstv %s1604_s5  ;;  %s1549_s25 = sld [smem:[#allocation3 + $0x9]] }
  0x56   : > { %v663_v26 = vstv %s1611_s6  ;;  %s1556_s21 = sld [smem:[#allocation3 + $0x10]] }
  0x57   : > { %v391_v43 = vadd.f32 %v390_v40, %v389_v37  ;;  %v398_v44 = vadd.f32 %v397_v41, %v396_v38  ;;  %v645_v27 = vstv %s1597_s7  ;;  %s1563_s5 = sld [smem:[#allocation3 + $0x17]] }
  0x58   : > { %v681_v31 = vstv %s1625_s8  ;;  %s1570_s6 = sld [smem:[#allocation3 + $0x1e]] }
  0x59   : > { %v406_v46 = vmul.f32 %v405_v42, %v391_v43  ;;  %v407_v47 = vmul.f32 %v405_v42, %v398_v44  ;;  %v690_v32 = vstv %s1632_s12  ;;  %s1577_s7 = sld [smem:[#allocation3 + $0x25]] }
  0x5a   : > { %v672_v33 = vstv %s1618_s24  ;;  %s1584_s8 = sld [smem:[#allocation3 + $0x2c]] }
  0x5b   : > { %v427_v50 = vrot.slane %v407_v47, 7  ;;  %v2098_v51 = vld [vmem:[#allocation2 + $0x1] sm:$0x7]  ;;  %v712_v37 = vstv %s1549_s25  ;;  %s1598_s12 = sld [smem:[#allocation3 + $0x3a]] }
  0x5c   : > { %v2100_v52 = vld [vmem:[#allocation2] sm:$0x7]  ;;  %v479_v53 = vmul.f32 %v478_v45, %v2098_v51  ;;  %v489_v60 = vmul.f32 %v488_v57, %v2098_v51  ;;  %v469_v61 = vmul.f32 %v468_v58, %v2098_v51  ;;  %v625_v8 = vmul.f32 %v624_v5, %v2098_v51  ;;  %s1612_s24 = sld [smem:[#allocation3 + $0x48]] }
  0x5d   : > { %v458_v54 = vmul.f32 %v457_v48, %v2100_v52  ;;  %v438_v55 = vmul.f32 %v437_v49, %v2100_v52  ;;  %v428_v56 = vsel %vm419_vm2, %v406_v46, %v427_v50  ;;  %v448_v62 = vmul.f32 %v447_v59, %v2100_v52  ;;  %s1605_s25 = sld [smem:[#allocation3 + $0x41]] }
  0x5e   : > { %431 = vst.msk [vmem:[#allocation2 + $0x5] sm:$0x3] %vm2090_vm3, %v428_v56  ;;  %481 = vrot.lane.b32.xlu2 %v479_v53, %s1923_s9  ;;  %v598_v2 = vmul.f32 %v597_v63, %v2100_v52  ;;  %v580_v3 = vmul.f32 %v579_v0, %v2100_v52  ;;  %v589_v4 = vmul.f32 %v588_v1, %v2100_v52  ;;  %v721_v38 = vstv %s1556_s21  ;;  %s1619_s21 = sld [smem:[#allocation3 + $0x4f]]  ;;  %v863_v63 = vld [vmem:[#allocation2 + $0x1] sm:$0x3] }
  0x5f   : > { %460 = vrot.lane.b32.xlu1 %v458_v54, %s1924_s10  ;;  %440 = vrot.lane.b32.xlu0 %v438_v55, %s1925_s13  ;;  %v607_v9 = vmul.f32 %v606_v6, %v2098_v51  ;;  %v616_v10 = vmul.f32 %v615_v7, %v2098_v51  ;;  %v730_v39 = vstv %s1563_s5  ;;  %v713_v40 = vmul.f32 %v712_v37, %v2100_v52  ;;  %s1633_s5 = sld [smem:[#allocation3 + $0x5d]] }
  0x60   : > { %v722_v41 = vmul.f32 %v721_v38, %v2100_v52  ;;  %v731_v42 = vmul.f32 %v730_v39, %v2100_v52  ;;  %v739_v43 = vstv %s1570_s6  ;;  %v748_v44 = vstv %s1577_s7  ;;  %s1626_s6 = sld [smem:[#allocation3 + $0x56]] }
  0x61   : > { %v757_v45 = vstv %s1584_s8  ;;  %v740_v46 = vmul.f32 %v739_v43, %v2098_v51  ;;  %v749_v47 = vmul.f32 %v748_v44, %v2098_v51  ;;  %v778_v49 = vstv %s1598_s12  ;;  %s1564_s7 = sld [smem:[#allocation3 + $0x18]] }
  0x62   : > { %v758_v48 = vmul.f32 %v757_v45, %v2098_v51  ;;  %v796_v50 = vstv %s1612_s24  ;;  %s1557_s8 = sld [smem:[#allocation3 + $0x11]] }
  0x63   : > { %v787_v53 = vstv %s1605_s25  ;;  %s1550_s12 = sld [smem:[#allocation3 + $0xa]] }
  0x64   : > { %v805_v57 = vstv %s1619_s21  ;;  %s1585_s24 = sld [smem:[#allocation3 + $0x2d]] }
  0x65   : > { %v2129_v11 = vld [vmem:[#allocation2 + $0x4] sm:$0x7]  ;;  %v823_v58 = vstv %s1633_s5  ;;  %s1578_s25 = sld [smem:[#allocation3 + $0x26]] }
  0x66   : > { %491 = vrot.lane.b32.xlu2 %v489_v60, %s1926_s27  ;;  %v512_v15 = vmul.f32 %v511_v12, %v2129_v11  ;;  %v521_v16 = vmul.f32 %v520_v13, %v2129_v11  ;;  %v530_v17 = vmul.f32 %v529_v14, %v2129_v11  ;;  %v2137_v18 = vld [vmem:[#allocation2 + $0x5] sm:$0x7]  ;;  %v655_v28 = vmul.f32 %v654_v25, %v2129_v11  ;;  %s1571_s21 = sld [smem:[#allocation3 + $0x1f]] }
  0x67   : > { %471 = vrot.lane.b32.xlu1 %v469_v61, %s1927_s28  ;;  %450 = vrot.lane.b32.xlu0 %v448_v62, %s1928_s30  ;;  %v540_v22 = vmul.f32 %v539_v19, %v2137_v18  ;;  %v549_v23 = vmul.f32 %v548_v20, %v2137_v18  ;;  %v558_v24 = vmul.f32 %v557_v21, %v2137_v18  ;;  %v814_v59 = vstv %s1626_s6  ;;  %s1551_s5 = sld [smem:[#allocation3 + $0xb]] }
  0x68   : > { %v664_v29 = vmul.f32 %v663_v26, %v2129_v11  ;;  %v646_v30 = vmul.f32 %v645_v27, %v2129_v11  ;;  %v682_v34 = vmul.f32 %v681_v31, %v2137_v18  ;;  %v691_v35 = vmul.f32 %v690_v32, %v2137_v18  ;;  %s1606_s6 = sld [smem:[#allocation3 + $0x42]]  ;;  %v929_v26 = vld [vmem:[#allocation2 + $0x5] sm:$0x3] }
  0x69   : > { %v673_v36 = vmul.f32 %v672_v33, %v2137_v18  ;;  %v779_v54 = vmul.f32 %v778_v49, %v2129_v11  ;;  %v797_v55 = vmul.f32 %v796_v50, %v2129_v11  ;;  %v788_v56 = vmul.f32 %v787_v53, %v2129_v11 }
  0x6a   : > { %v806_v60 = vmul.f32 %v805_v57, %v2137_v18  ;;  %v824_v61 = vmul.f32 %v823_v58, %v2137_v18  ;;  %v815_v62 = vmul.f32 %v814_v59, %v2137_v18  ;;  %v864_v0 = vstv %s1564_s7  ;;  %s1599_s7 = sld [smem:[#allocation3 + $0x3b]] }
  0x6b   : > { %v854_v1 = vstv %s1557_s8  ;;  %v891_v7 = vstv %s1585_s24  ;;  %s1600_s8 = sld [smem:[#allocation3 + $0x3c]] }
  0x6c   : > { %v855_v5 = vmul.f32 %v854_v1, %v2100_v52  ;;  %v892_v12 = vmul.f32 %v891_v7, %v2098_v51  ;;  %s1613_s24 = sld [smem:[#allocation3 + $0x49]] }
  0x6e   : > { %582 = vrot.lane.b32.xlu2 %v580_v3, %s1925_s13  ;;  %v845_v3 = vstv %s1550_s12  ;;  %s1558_s12 = sld [smem:[#allocation3 + $0x12]] }
  0x6f   : > { %600 = vrot.lane.b32.xlu1 %v598_v2, %s1924_s10  ;;  %591 = vrot.lane.b32.xlu0 %v589_v4, %s1928_s30  ;;  %v865_v4 = vmul.f32 %v864_v0, %v863_v63  ;;  %v846_v6 = vmul.f32 %v845_v3, %v2100_v52 }
  0x70   : > { %v911_v19 = vstv %s1599_s7  ;;  %s1627_s7 = sld [smem:[#allocation3 + $0x57]] }
  0x72   : > { %v930_v27 = vstv %s1613_s24  ;;  %s258_s24 = sld [smem:[#allocation3]] }
  0x73   : > { %v931_v32 = vmul.f32 %v930_v27, %v929_v26 }
  0x76   : > { %609 = vrot.lane.b32.xlu2 %v607_v9, %s1927_s28  ;;  %v948_v43 = vstv %s1627_s7  ;;  %s2246_s7 = sld [smem:[#allocation3 + $0x27]] }
  0x77   : > { %627 = vrot.lane.b32.xlu1 %v625_v8, %s1926_s27  ;;  %618 = vrot.lane.b32.xlu0 %v616_v10, %s1923_s9  ;;  %v882_v8 = vstv %s1578_s25  ;;  %v873_v10 = vstv %s1571_s21  ;;  %s1607_s25 = sld [smem:[#allocation3 + $0x43]] }
  0x78   : > { %v883_v13 = vmul.f32 %v882_v8, %v2098_v51  ;;  %v874_v14 = vmul.f32 %v873_v10, %v2098_v51  ;;  %s1565_s21 = sld [smem:[#allocation3 + $0x19]]  ;;  %v434_v53 = vstv %s258_s24  ;;  %s1929_s24 = smov 50  }
  0x79   : > { %v435_v58 = vmul.f32 %v434_v53, %v2100_v52 }
  0x7d   : > { %v1054_v33 = vstv %s1607_s25  ;;  %s2222_s25 = sld [smem:[#allocation3 + $0x3d]] }
  0x7e   : > { %523 = vrot.lane.b32.xlu2 %v521_v16, %s1928_s30  ;;  %v920_v16 = vstv %s1606_s6  ;;  %s1572_s6 = sld [smem:[#allocation3 + $0x20]]  ;;  %v1055_v38 = vmul.f32 %v1054_v33, %v2129_v11 }
  0x7f   : > { %514 = vrot.lane.b32.xlu1 %v512_v15, %s1925_s13  ;;  %532 = vrot.lane.b32.xlu0 %v530_v17, %s1924_s10  ;;  %v979_v15 = vstv %s1551_s5  ;;  %v921_v21 = vmul.f32 %v920_v16, %v2129_v11  ;;  %s1620_s5 = sld [smem:[#allocation3 + $0x50]] }
  0x80   : > { %v980_v20 = vmul.f32 %v979_v15, %v2100_v52 }
  0x86   : > { %551 = vrot.lane.b32.xlu2 %v549_v23, %s1923_s9  ;;  %v1045_v23 = vstv %s1600_s8  ;;  %s1552_s8 = sld [smem:[#allocation3 + $0xc]] }
  0x87   : > { %542 = vrot.lane.b32.xlu1 %v540_v22, %s1927_s28  ;;  %560 = vrot.lane.b32.xlu0 %v558_v24, %s1926_s27  ;;  %v912_v22 = vmul.f32 %v911_v19, %v2129_v11  ;;  %v988_v24 = vstv %s1558_s12  ;;  %s1541_s12 = sld [smem:[#allocation3 + $0x1]] }
  0x88   : > { %v989_v31 = vmul.f32 %v988_v24, %v2100_v52 }
  0x8c   : > { %v1112_v45 = vstv %s1552_s8  ;;  %s2250_s8 = sld [smem:[#allocation3 + $0x5e]] }
  0x8d   : > { %v576_v49 = vstv %s1541_s12  ;;  %s1590_s12 = sld [smem:[#allocation3 + $0x32]] }
  0x8e   : > { %666 = vrot.lane.b32.xlu2 %v664_v29, %s1924_s10  ;;  %v577_v57 = vmul.f32 %v576_v49, %v2100_v52 }
  0x8f   : > { %657 = vrot.lane.b32.xlu1 %v655_v28, %s1928_s30  ;;  %648 = vrot.lane.b32.xlu0 %v646_v30, %s1925_s13  ;;  %v1046_v30 = vmul.f32 %v1045_v23, %v2129_v11 }
  0x92   : > { %v957_v27 = vstv %s2250_s8  ;;  %s2314_s8 = sld [smem:[#allocation3 + $0x2e]] }
  0x96   : > { %693 = vrot.lane.b32.xlu2 %v691_v35, %s1926_s27 }
  0x97   : > { %684 = vrot.lane.b32.xlu1 %v682_v34, %s1923_s9  ;;  %675 = vrot.lane.b32.xlu0 %v673_v36, %s1927_s28  ;;  %v997_v34 = vstv %s1565_s21  ;;  %v939_v36 = vstv %s1620_s5  ;;  %s2225_s21 = sld [smem:[#allocation3 + $0x13]] }
  0x98   : > { %v998_v39 = vmul.f32 %v997_v34, %v2098_v51  ;;  %s2227_s5 = sld [smem:[#allocation3 + $0x4a]] }
  0x9d   : > { %v1121_v63 = vstv %s2225_s21  ;;  %s1542_s21 = sld [smem:[#allocation3 + $0x2]] }
  0x9e   : > { %724 = vrot.lane.b32.xlu2 %v722_v41, %s1928_s30  ;;  %v940_v41 = vmul.f32 %v939_v36, %v2137_v18  ;;  %v1063_v3 = vstv %s2227_s5  ;;  %v1122_v8 = vmul.f32 %v1121_v63, %v2100_v52  ;;  %s1589_s5 = sld [smem:[#allocation3 + $0x31]] }
  0x9f   : > { %715 = vrot.lane.b32.xlu1 %v713_v40, %s1925_s13  ;;  %733 = vrot.lane.b32.xlu0 %v731_v42, %s1924_s10  ;;  %v1006_v42 = vstv %s1572_s6  ;;  %s2239_s6 = sld [smem:[#allocation3 + $0x51]] }
  0xa6   : > { %751 = vrot.lane.b32.xlu2 %v749_v47, %s1923_s9  ;;  %v1007_v47 = vmul.f32 %v1006_v42, %v2098_v51 }
  0xa7   : > { %742 = vrot.lane.b32.xlu1 %v740_v46, %s1927_s28  ;;  %760 = vrot.lane.b32.xlu0 %v758_v48, %s1926_s27  ;;  %v949_v48 = vmul.f32 %v948_v43, %v2137_v18 }
  0xae   : > { %781 = vrot.lane.b32.xlu2 %v779_v54, %s1925_s13  ;;  %v1113_v54 = vmul.f32 %v1112_v45, %v2100_v52 }
  0xaf   : > { %799 = vrot.lane.b32.xlu1 %v797_v55, %s1924_s10  ;;  %790 = vrot.lane.b32.xlu0 %v788_v56, %s1928_s30 }
  0xb6   : > { %808 = vrot.lane.b32.xlu2 %v806_v60, %s1927_s28 }
  0xb7   : > { %826 = vrot.lane.b32.xlu1 %v824_v61, %s1926_s27  ;;  %817 = vrot.lane.b32.xlu0 %v815_v62, %s1923_s9  ;;  %v1178_v62 = vstv %s2222_s25  ;;  %s1930_s25 = smov 51  }
  0xb8   : > { %v2181_v2 = vpop.permute.xlu2 %481  ;;  %v1179_v7 = vmul.f32 %v1178_v62, %v2129_v11 }
  0xbe   : > { %867 = vrot.lane.b32.xlu2 %v865_v4, %s1924_s10 }
  0xbf   : > { %857 = vrot.lane.b32.xlu1 %v855_v5, %s1928_s30  ;;  %848 = vrot.lane.b32.xlu0 %v846_v6, %s1925_s13 }
  0xc0   : > { %v2188_v9 = vpop.permute.xlu2 %491 }
  0xc1   : > { %v493_v45 = vrot.slane %v2188_v9, 7 }
  0xc3   : > { %v495_v53 = vsel %vm494_vm10, %v493_v45, %v2188_v9 }
  0xc6   : > { %894 = vrot.lane.b32.xlu2 %v892_v12, %s1926_s27 }
  0xc7   : > { %885 = vrot.lane.b32.xlu1 %v883_v13, %s1923_s9  ;;  %876 = vrot.lane.b32.xlu0 %v874_v14, %s1927_s28  ;;  %v1064_v13 = vmul.f32 %v1063_v3, %v2137_v18 }
  0xc8   : > { %v2196_v17 = vpop.permute.xlu2 %582 }
  0xc9   : > { %v584_v50 = vrot.slane %v2196_v17, 1 }
  0xcb   : > { %v585_v60 = vsel %vm443_vm5, %v2196_v17, %v584_v50 }
  0xcc   : > { %v587_v5 = vadd.f32 %v585_v60, %v577_v57 }
  0xce   : > { %982 = vrot.lane.b32.xlu2 %v980_v20, %s1925_s13 }
  0xcf   : > { %923 = vrot.lane.b32.xlu1 %v921_v21, %s1928_s30  ;;  %914 = vrot.lane.b32.xlu0 %v912_v22, %s1925_s13  ;;  %v1072_v21 = vstv %s2239_s6  ;;  %v1015_v22 = vstv %s2246_s7  ;;  %s1566_s6 = sld [smem:[#allocation3 + $0x1a]] }
  0xd0   : > { %v2206_v28 = vpop.permute.xlu2 %609  ;;  %v1073_v34 = vmul.f32 %v1072_v21, %v2137_v18  ;;  %v1016_v36 = vmul.f32 %v1015_v22, %v2098_v51  ;;  %s2307_s7 = sld [smem:[#allocation3 + $0x33]] }
  0xd1   : > { %v2204_v25 = vpop.permute.xlu1 %460  ;;  %v441_v29 = vpop.permute.xlu0 %440  ;;  %v611_v19 = vrot.slane %v2206_v28, 7 }
  0xd2   : > { %v442_v55 = vrot.slane %v441_v29, 1  ;;  %v462_v14 = vrot.slane %v2204_v25, 1 }
  0xd4   : > { %v444_v0 = vsel %vm443_vm5, %v441_v29, %v442_v55  ;;  %v464_v23 = vsel %vm463_vm7, %v2204_v25, %v462_v14  ;;  %v612_v25 = vsel %vm474_vm8, %v611_v19, %v2206_v28  ;;  %v508_v19 = vstv %s1589_s5  ;;  %s1635_s5 = sld [smem:[#allocation3 + $0x5f]] }
  0xd5   : > { %v446_v10 = vadd.f32 %v444_v0, %v435_v58 }
  0xd6   : > { %1048 = vrot.lane.b32.xlu2 %v1046_v30, %s1925_s13 }
  0xd7   : > { %991 = vrot.lane.b32.xlu1 %v989_v31, %s1928_s30  ;;  %933 = vrot.lane.b32.xlu0 %v931_v32, %s1924_s10 }
  0xd8   : > { %v2217_v40 = vpop.permute.xlu2 %523 }
  0xd9   : > { %v2213_v35 = vpop.permute.xlu1 %471  ;;  %v451_v37 = vpop.permute.xlu0 %450 }
  0xda   : > { %v452_v59 = vrot.slane %v451_v37, 1  ;;  %v473_v24 = vrot.slane %v2213_v35, 7 }
  0xdc   : > { %v454_v6 = vsel %vm453_vm6, %v451_v37, %v452_v59  ;;  %v958_v37 = vmul.f32 %v957_v27, %v2137_v18 }
  0xdd   : > { %v456_v15 = vadd.f32 %v454_v6, %v446_v10 }
  0xde   : > { %1057 = vrot.lane.b32.xlu2 %v1055_v38, %s1928_s30  ;;  %v483_v38 = vrot.slane %v2181_v2, 7 }
  0xdf   : > { %1000 = vrot.lane.b32.xlu1 %v998_v39, %s1924_s10  ;;  %942 = vrot.lane.b32.xlu0 %v940_v41, %s1927_s28  ;;  %v466_v29 = vadd.f32 %v464_v23, %v456_v15  ;;  %v475_v39 = vsel %vm474_vm8, %v473_v24, %v2213_v35 }
  0xe0   : > { %v2233_v56 = vpop.permute.xlu2 %551  ;;  %v485_v28 = vsel %vm484_vm9, %v483_v38, %v2181_v2  ;;  %v642_v2 = vstv %s1590_s12  ;;  %v1130_v38 = vstv %s1566_s6  ;;  %s2327_s12 = sld [smem:[#allocation3 + $0x4b]] }
  0xe1   : > { %v601_v44 = vpop.permute.xlu1 %600  ;;  %v592_v46 = vpop.permute.xlu0 %591  ;;  %v477_v41 = vadd.f32 %v475_v39, %v466_v29  ;;  %v643_v58 = vmul.f32 %v642_v2, %v2129_v11  ;;  %v775_v2 = vstv %s2307_s7  ;;  %s1553_s6 = sld [smem:[#allocation3 + $0xd]] }
  0xe2   : > { %v593_v61 = vrot.slane %v592_v46, 1  ;;  %v602_v16 = vrot.slane %v601_v44, 1  ;;  %s1628_s7 = sld [smem:[#allocation3 + $0x58]] }
  0xe3   : > { %v487_v49 = vadd.f32 %v485_v28, %v477_v41  ;;  %v1131_v28 = vmul.f32 %v1130_v38, %v2098_v51 }
  0xe4   : > { %v594_v12 = vsel %vm453_vm6, %v592_v46, %v593_v61  ;;  %v603_v30 = vsel %vm463_vm7, %v601_v44, %v602_v16  ;;  %v709_v16 = vstv %s1542_s21  ;;  %s1608_s21 = sld [smem:[#allocation3 + $0x44]] }
  0xe5   : > { %v596_v17 = vadd.f32 %v594_v12, %v587_v5  ;;  %v497_v55 = vadd.f32 %v495_v53, %v487_v49 }
  0xe6   : > { %1009 = vrot.lane.b32.xlu2 %v1007_v47, %s1927_s28 }
  0xe7   : > { %951 = vrot.lane.b32.xlu1 %v949_v48, %s1923_s9  ;;  %1115 = vrot.lane.b32.xlu0 %v1113_v54, %s1925_s13  ;;  %v605_v33 = vadd.f32 %v603_v30, %v596_v17 }
  0xe8   : > { %v667_v20 = vpop.permute.xlu2 %666 }
  0xe9   : > { %v628_v1 = vpop.permute.xlu1 %627  ;;  %v619_v4 = vpop.permute.xlu0 %618  ;;  %v614_v43 = vadd.f32 %v612_v25, %v605_v33  ;;  %v668_v9 = vrot.slane %v667_v20, 1  ;;  %v509_v33 = vmul.f32 %v508_v19, %v2129_v11  ;;  %v525_v25 = vrot.slane %v2217_v40, 1 }
  0xea   : > { %v620_v31 = vrot.slane %v619_v4, 7  ;;  %v629_v44 = vrot.slane %v628_v1, 7  ;;  %v1187_v38 = vstv %s1608_s21  ;;  %s1560_s21 = sld [smem:[#allocation3 + $0x14]] }
  0xeb   : > { %v669_v6 = vsel %vm463_vm7, %v667_v20, %v668_v9  ;;  %v710_v20 = vmul.f32 %v709_v16, %v2100_v52  ;;  %v776_v9 = vmul.f32 %v775_v2, %v2129_v11 }
  0xec   : > { %v621_v42 = vsel %vm484_vm9, %v620_v31, %v619_v4  ;;  %v630_v50 = vsel %vm494_vm10, %v629_v44, %v628_v1 }
  0xed   : > { %v623_v46 = vadd.f32 %v621_v42, %v614_v43 }
  0xee   : > { %1181 = vrot.lane.b32.xlu2 %v1179_v7, %s1925_s13 }
  0xef   : > { %1124 = vrot.lane.b32.xlu1 %v1122_v8, %s1928_s30  ;;  %1066 = vrot.lane.b32.xlu0 %v1064_v13, %s1924_s10  ;;  %v632_v54 = vadd.f32 %v630_v50, %v623_v46 }
  0xf0   : > { %v694_v35 = vpop.permute.xlu2 %693 }
  0xf1   : > { %v2267_v26 = vpop.permute.xlu1 %514  ;;  %v2271_v32 = vpop.permute.xlu0 %532  ;;  %v695_v12 = vrot.slane %v694_v35, 7 }
  0xf2   : > { %v516_v21 = vrot.slane %v2267_v26, 1  ;;  %v534_v45 = vrot.slane %v2271_v32, 1 }
  0xf3   : > { %v696_v23 = vsel %vm494_vm10, %v695_v12, %v694_v35 }
  0xf6   : > { %1075 = vrot.lane.b32.xlu2 %v1073_v34, %s1927_s28  ;;  %v517_v34 = vsel %vm443_vm5, %v2267_v26, %v516_v21  ;;  %v526_v26 = vsel %vm453_vm6, %v2217_v40, %v525_v25 }
  0xf7   : > { %1018 = vrot.lane.b32.xlu1 %v1016_v36, %s1923_s9  ;;  %960 = vrot.lane.b32.xlu0 %v958_v37, %s1926_s27  ;;  %v519_v42 = vadd.f32 %v517_v34, %v509_v33 }
  0xf8   : > { %v725_v62 = vpop.permute.xlu2 %724 }
  0xf9   : > { %v2288_v47 = vpop.permute.xlu1 %542  ;;  %v2290_v48 = vpop.permute.xlu0 %560  ;;  %v726_v27 = vrot.slane %v725_v62, 1 }
  0xfa   : > { %v544_v35 = vrot.slane %v2288_v47, 7  ;;  %v562_v19 = vrot.slane %v2290_v48, 7 }
  0xfb   : > { %v727_v39 = vsel %vm453_vm6, %v725_v62, %v726_v27  ;;  %v535_v62 = vsel %vm463_vm7, %v2271_v32, %v534_v45 }
  0xfe   : > { %634 = vrot.lane.b32.xlu2 %v632_v54, %s1929_s24 }
  0xff   : > { %499 = vrot.lane.b32.xlu0 %v497_v55, %s1930_s25  ;;  %v528_v55 = vadd.f32 %v526_v26, %v519_v42 }
 0x100   : > { %v752_v14 = vpop.permute.xlu2 %751 }
 0x101   : > { %v658_v57 = vpop.permute.xlu1 %657  ;;  %v649_v59 = vpop.permute.xlu0 %648  ;;  %v753_v49 = vrot.slane %v752_v14, 7 }
 0x102   : > { %v659_v60 = vrot.slane %v658_v57, 1  ;;  %v650_v61 = vrot.slane %v649_v59, 1 }
 0x104   : > { %v651_v63 = vsel %vm443_vm5, %v649_v59, %v650_v61  ;;  %v660_v1 = vsel %vm453_vm6, %v658_v57, %v659_v60  ;;  %v1024_v61 = vstv %s2314_s8  ;;  %s1567_s8 = sld [smem:[#allocation3 + $0x1b]] }
 0x105   : > { %v653_v0 = vadd.f32 %v651_v63, %v643_v58  ;;  %v545_v63 = vsel %vm474_vm8, %v544_v35, %v2288_v47  ;;  %v1245_v35 = vstv %s1553_s6  ;;  %s1580_s6 = sld [smem:[#allocation3 + $0x28]] }
 0x107   : > { %v662_v3 = vadd.f32 %v660_v1, %v653_v0  ;;  %v754_v0 = vsel %vm484_vm9, %v753_v49, %v752_v14  ;;  %v537_v1 = vadd.f32 %v535_v62, %v528_v55  ;;  %v1081_v49 = vstv %s1628_s7  ;;  %s1636_s7 = sld [smem:[#allocation3 + $0x60]] }
 0x108   : > { %v782_v44 = vpop.permute.xlu2 %781 }
 0x109   : > { %v685_v4 = vpop.permute.xlu1 %684  ;;  %v676_v5 = vpop.permute.xlu0 %675  ;;  %v671_v10 = vadd.f32 %v669_v6, %v662_v3  ;;  %v783_v57 = vrot.slane %v782_v44, 1 }
 0x10a   : > { %v686_v7 = vrot.slane %v685_v4, 7  ;;  %v677_v8 = vrot.slane %v676_v5, 7 }
 0x10b   : > { %v784_v3 = vsel %vm443_vm5, %v782_v44, %v783_v57 }
 0x10c   : > { %v678_v13 = vsel %vm474_vm8, %v677_v8, %v676_v5  ;;  %v687_v17 = vsel %vm484_vm9, %v686_v7, %v685_v4  ;;  %v553_v5 = vrot.slane %v2233_v56, 7  ;;  %v1025_v7 = vmul.f32 %v1024_v61, %v2098_v51 }
 0x10d   : > { %v680_v15 = vadd.f32 %v678_v13, %v671_v10  ;;  %v547_v8 = vadd.f32 %v545_v63, %v537_v1  ;;  %v786_v12 = vadd.f32 %v784_v3, %v776_v9 }
 0x10f   : > { %v689_v22 = vadd.f32 %v687_v17, %v680_v15  ;;  %v554_v17 = vsel %vm484_vm9, %v553_v5, %v2233_v56 }
 0x110   : > { %v809_v47 = vpop.permute.xlu2 %808  ;;  %v556_v21 = vadd.f32 %v554_v17, %v547_v8  ;;  %v1148_v8 = vstv %s1580_s6  ;;  %s1593_s6 = sld [smem:[#allocation3 + $0x35]] }
 0x111   : > { %v716_v24 = vpop.permute.xlu1 %715  ;;  %v734_v30 = vpop.permute.xlu0 %733  ;;  %v698_v31 = vadd.f32 %v696_v23, %v689_v22  ;;  %v810_v15 = vrot.slane %v809_v47, 7 }
 0x112   : > { %v717_v29 = vrot.slane %v716_v24, 1  ;;  %v735_v41 = vrot.slane %v734_v30, 1 }
 0x113   : > { %700 = vrot.lane.b32.xlu0 %v698_v31, %s1929_s24  ;;  %s1931_s24 = smov 49   ;;  %v811_v27 = vsel %vm474_vm8, %v810_v15, %v809_v47 }
 0x114   : > { %v718_v36 = vsel %vm443_vm5, %v716_v24, %v717_v29  ;;  %v736_v50 = vsel %vm463_vm7, %v734_v30, %v735_v41  ;;  %v1196_v24 = vstv %s2327_s12  ;;  %v563_v29 = vsel %vm494_vm10, %v562_v19, %v2290_v48  ;;  %s1573_s12 = sld [smem:[#allocation3 + $0x21]] }
 0x115   : > { %v720_v37 = vadd.f32 %v718_v36, %v710_v20  ;;  %v1197_v56 = vmul.f32 %v1196_v24, %v2137_v18  ;;  %v565_v31 = vadd.f32 %v563_v29, %v556_v21  ;;  %v1090_v41 = vstv %s1635_s5  ;;  %s1629_s5 = sld [smem:[#allocation3 + $0x59]] }
 0x117   : > { %v729_v43 = vadd.f32 %v727_v39, %v720_v37 }
 0x118   : > { %v868_v26 = vpop.permute.xlu2 %867 }
 0x119   : > { %v743_v46 = vpop.permute.xlu1 %742  ;;  %v761_v54 = vpop.permute.xlu0 %760  ;;  %v738_v58 = vadd.f32 %v736_v50, %v729_v43  ;;  %v1188_v43 = vmul.f32 %v1187_v38, %v2129_v11  ;;  %v1263_v50 = vstv %s1567_s8  ;;  %s1622_s8 = sld [smem:[#allocation3 + $0x52]] }
 0x11a   : > { %v744_v53 = vrot.slane %v743_v46, 7  ;;  %v762_v60 = vrot.slane %v761_v54, 7  ;;  %v1264_v55 = vmul.f32 %v1263_v50, %v2098_v51  ;;  %v1139_v57 = vstv %s1573_s12  ;;  %s1588_s12 = sld [smem:[#allocation3 + $0x30]] }
 0x11b   : > { %1133 = vrot.lane.b32.xlu0 %v1131_v28, %s1924_s10  ;;  %v1091_v28 = vmul.f32 %v1090_v41, %v2137_v18  ;;  %v1214_v62 = vstv %s1629_s5  ;;  %v1140_v63 = vmul.f32 %v1139_v57, %v2098_v51  ;;  %s1574_s5 = sld [smem:[#allocation3 + $0x22]] }
 0x11c   : > { %v745_v59 = vsel %vm474_vm8, %v744_v53, %v743_v46  ;;  %v763_v6 = vsel %vm494_vm10, %v762_v60, %v761_v54  ;;  %v1246_v53 = vmul.f32 %v1245_v35, %v2100_v52  ;;  %v1082_v54 = vmul.f32 %v1081_v49, %v2137_v18 }
 0x11d   : > { %v747_v40 = vadd.f32 %v745_v59, %v738_v58  ;;  %v1254_v59 = vstv %s1560_s21  ;;  %v1215_v1 = vmul.f32 %v1214_v62, %v2137_v18  ;;  %s2391_s21 = sld [smem:[#allocation3 + $0x2f]] }
 0x11f   : > { %v756_v4 = vadd.f32 %v754_v0, %v747_v40  ;;  %v1255_v0 = vmul.f32 %v1254_v59, %v2100_v52 }
 0x120   : > { %v2365_v58 = vpop.permute.xlu2 %894 }
 0x121   : > { %v765_v10 = vadd.f32 %v763_v6, %v756_v4  ;;  %v800_v32 = vpop.permute.xlu1 %799  ;;  %v791_v13 = vpop.permute.xlu0 %790  ;;  %v1272_v41 = vstv %s1574_s5  ;;  %s1595_s5 = sld [smem:[#allocation3 + $0x37]] }
 0x122   : > { %v801_v14 = vrot.slane %v800_v32, 1  ;;  %v792_v16 = vrot.slane %v791_v13, 1 }
 0x123   : > { %767 = vrot.lane.b32.xlu1 %v765_v10, %s1931_s24  ;;  %1027 = vrot.lane.b32.xlu0 %v1025_v7, %s1926_s27  ;;  %v869_v10 = vrot.slane %v868_v26, 7 }
 0x124   : > { %v793_v22 = vsel %vm453_vm6, %v791_v13, %v792_v16  ;;  %v802_v23 = vsel %vm463_vm7, %v800_v32, %v801_v14  ;;  %v1223_v32 = vstv %s1636_s7  ;;  %v1149_v14 = vmul.f32 %v1148_v8, %v2098_v51  ;;  %s2407_s7 = sld [smem:[#allocation3 + $0x29]] }
 0x125   : > { %v795_v20 = vadd.f32 %v793_v22, %v786_v12  ;;  %v1224_v16 = vmul.f32 %v1223_v32, %v2137_v18  ;;  %v870_v17 = vsel %vm463_vm7, %v869_v10, %v868_v26  ;;  %v1205_v22 = vstv %s1622_s8  ;;  %s1630_s8 = sld [smem:[#allocation3 + $0x5a]] }
 0x126   : > { %v1206_v29 = vmul.f32 %v1205_v22, %v2137_v18  ;;  %v1042_v26 = vstv %s1593_s6  ;;  %s356_s6 = sld [smem:[#allocation7]] }
 0x127   : > { %v804_v30 = vadd.f32 %v802_v23, %v795_v20  ;;  %v1043_v50 = vmul.f32 %v1042_v26, %v2129_v11 }
 0x128   : > { %v2379_v12 = vpop.permute.xlu2 %982 }
 0x129   : > { %v827_v33 = vpop.permute.xlu1 %826  ;;  %v813_v34 = vadd.f32 %v811_v27, %v804_v30  ;;  %v818_v36 = vpop.permute.xlu0 %817  ;;  %v1290_v27 = vstv %s1588_s12  ;;  %s1546_s12 = sld [smem:[#allocation3 + $0x6]] }
 0x12a   : > { %v828_v25 = vrot.slane %v827_v33, 7  ;;  %v819_v37 = vrot.slane %v818_v36, 7 }
 0x12b   : > { %567 = vrot.lane.b32.xlu1 %v565_v31, %s1930_s25  ;;  %1199 = vrot.lane.b32.xlu0 %v1197_v56, %s1924_s10  ;;  %s1543_s25 = sld [smem:[#allocation3 + $0x3]] }
 0x12c   : > { %v820_v39 = vsel %vm484_vm9, %v819_v37, %v818_v36  ;;  %v829_v48 = vsel %vm494_vm10, %v828_v25, %v827_v33  ;;  %v1744_v33 = vld [vmem:[#allocation2 + $0x1] sm:$0x7]  ;;  %v896_v36 = vrot.slane %v2365_v58, 7 }
 0x12d   : > { %v822_v42 = vadd.f32 %v820_v39, %v813_v34  ;;  %v1291_v34 = vmul.f32 %v1744_v33, %v1290_v27  ;;  %v1157_v39 = vstv %s2391_s21  ;;  %s1933_s21 = smov 46  }
 0x12f   : > { %v831_v44 = vadd.f32 %v829_v48, %v822_v42  ;;  %v897_v42 = vsel %vm494_vm10, %v896_v36, %v2365_v58 }
 0x130   : > { %v1049_v56 = vpop.permute.xlu2 %1048 }
 0x131   : > { %v849_v45 = vpop.permute.xlu0 %848  ;;  %833 = vrot.lane.b32.xlu2 %v831_v44, %s1931_s24  ;;  %v858_v46 = vpop.permute.xlu1 %857  ;;  %s1602_s24 = sld [smem:[#allocation3 + $0x3e]]  ;;  %v842_v60 = vstv %s1543_s25 }
 0x132   : > { %v850_v40 = vrot.slane %v849_v45, 1  ;;  %v843_v9 = vmul.f32 %v842_v60, %v2100_v52  ;;  %v859_v4 = vrot.slane %v858_v46, 1  ;;  %s1609_s25 = sld [smem:[#allocation3 + $0x45]] }
 0x133   : > { %1190 = vrot.lane.b32.xlu1 %v1188_v43, %s1928_s30  ;;  %1093 = vrot.lane.b32.xlu0 %v1091_v28, %s1926_s27  ;;  %v1158_v28 = vmul.f32 %v1744_v33, %v1157_v39  ;;  %v2453_v39 = vld [vmem:[#allocation2] sm:$0x7] }
 0x134   : > { %v851_v3 = vsel %vm443_vm5, %v849_v45, %v850_v40  ;;  %v860_v52 = vsel %vm453_vm6, %v858_v46, %v859_v4  ;;  %v1050_v45 = vrot.slane %v1049_v56, 1  ;;  %v1273_v46 = vmul.f32 %v1744_v33, %v1272_v41 }
 0x135   : > { %v853_v7 = vadd.f32 %v851_v3, %v843_v9 }
 0x136   : > { %v1051_v57 = vsel %vm443_vm5, %v1049_v56, %v1050_v45 }
 0x137   : > { %v1311_v6 = vstv %s1602_s24  ;;  %v862_v15 = vadd.f32 %v860_v52, %v853_v7  ;;  %s1592_s24 = sld [smem:[#allocation3 + $0x34]]  ;;  %v1347_v52 = vstv %s1630_s8 }
 0x138   : > { %v1312_v47 = vmul.f32 %v1311_v6, %v2129_v11  ;;  %v1320_v24 = vstv %s1609_s25  ;;  %s1637_s25 = sld [smem:[#allocation3 + $0x61]] }
 0x139   : > { %v877_v2 = vpop.permute.xlu0 %876  ;;  %1248 = vrot.lane.b32.xlu2 %v1246_v53, %s1925_s13  ;;  %v886_v61 = vpop.permute.xlu1 %885  ;;  %v872_v23 = vadd.f32 %v870_v17, %v862_v15  ;;  %v1321_v30 = vmul.f32 %v1320_v24, %v2129_v11  ;;  %v1745_v17 = vld [vmem:[#allocation2 + $0x5] sm:$0x7] }
 0x13a   : > { %v878_v19 = vrot.slane %v877_v2, 7  ;;  %v887_v20 = vrot.slane %v886_v61, 7  ;;  %v1058_v53 = vpop.permute.xlu2 %1057 }
 0x13b   : > { %1084 = vrot.lane.b32.xlu1 %v1082_v54, %s1923_s9  ;;  %1266 = vrot.lane.b32.xlu0 %v1264_v55, %s1924_s10  ;;  %v1059_v58 = vrot.slane %v1058_v53, 1 }
 0x13c   : > { %v879_v51 = vsel %vm474_vm8, %v878_v19, %v877_v2  ;;  %v888_v25 = vsel %vm484_vm9, %v887_v20, %v886_v61  ;;  %v1053_v61 = vadd.f32 %v1051_v57, %v1043_v50 }
 0x13d   : > { %v881_v31 = vadd.f32 %v879_v51, %v872_v23  ;;  %v908_v43 = vstv %s1592_s24  ;;  %v1060_v9 = vsel %vm453_vm6, %v1058_v53, %v1059_v58  ;;  %s1934_s24 = smov 45  }
 0x13e   : > { %v909_v49 = vmul.f32 %v908_v43, %v2129_v11  ;;  %v1281_v11 = vstv %s2407_s7  ;;  %v1062_v4 = vadd.f32 %v1060_v9, %v1053_v61  ;;  %v1356_v20 = vstv %s1637_s25  ;;  %s1646_s7 = sshll.u32 %s1981_s19, 3  ;;  %s1406_s19 = scalar_lea.sflag [#allocation5], %s2071_s26 }
 0x13f   : > { %v890_v48 = vadd.f32 %v888_v25, %v881_v31  ;;  %v984_v25 = vrot.slane %v2379_v12, 1  ;;  %s1417_s25 = scalar_lea.hbm %s2581_s4, %s1646_s7 }
 0x141   : > { %v2373_v5 = vpop.permute.xlu0 %914  ;;  %1142 = vrot.lane.b32.xlu2 %v1140_v63, %s1927_s28  ;;  %v2382_v13 = vpop.permute.xlu1 %923  ;;  %v899_v35 = vadd.f32 %v897_v42, %v890_v48  ;;  %v985_v42 = vsel %vm443_vm5, %v2379_v12, %v984_v25 }
 0x142   : > { %v916_v44 = vrot.slane %v2373_v5, 1  ;;  %v925_v55 = vrot.slane %v2382_v13, 1 }
 0x143   : > { %1257 = vrot.lane.b32.xlu1 %v1255_v0, %s1928_s30  ;;  %1217 = vrot.lane.b32.xlu0 %v1215_v1, %s1923_s9  ;;  %v1282_v1 = vmul.f32 %v1744_v33, %v1281_v11 }
 0x144   : > { %v917_v54 = vsel %vm443_vm5, %v2373_v5, %v916_v44  ;;  %v926_v62 = vsel %vm453_vm6, %v2382_v13, %v925_v55  ;;  %v1010_v13 = vpop.permute.xlu2 %1009 }
 0x145   : > { %v919_v40 = vadd.f32 %v917_v54, %v909_v49  ;;  %v1011_v49 = vrot.slane %v1010_v13, 7 }
 0x147   : > { %v928_v3 = vadd.f32 %v926_v62, %v919_v40  ;;  %v1012_v12 = vsel %vm474_vm8, %v1011_v49, %v1010_v13 }
 0x149   : > { %v2387_v21 = vpop.permute.xlu0 %933  ;;  %1314 = vrot.lane.b32.xlu2 %v1312_v47, %s1925_s13  ;;  %v2399_v37 = vpop.permute.xlu1 %991  ;;  %s2404_s13 = sld [smem:[#allocation3 + $0x4c]] }
 0x14a   : > { %v935_v63 = vrot.slane %v2387_v21, 7  ;;  %v993_v43 = vrot.slane %v2399_v37, 1 }
 0x14b   : > { %1151 = vrot.lane.b32.xlu1 %v1149_v14, %s1923_s9  ;;  %1226 = vrot.lane.b32.xlu0 %v1224_v16, %s1926_s27 }
 0x14c   : > { %v936_v5 = vsel %vm463_vm7, %v935_v63, %v2387_v21  ;;  %v1348_v21 = vmul.f32 %v1745_v17, %v1347_v52  ;;  %v2444_v56 = vpop.permute.xlu2 %1181  ;;  %v994_v26 = vsel %vm453_vm6, %v2399_v37, %v993_v43 }
 0x14d   : > { %v938_v32 = vadd.f32 %v936_v5, %v928_v3  ;;  %v432_v3 = vld [vmem:[#allocation9] ss:$8 sm:$0x3] }
 0x14f   : > { %v1329_v60 = vstv %s2404_s13  ;;  %s1638_s13 = sld [smem:[#allocation7 + $0x1]] }
 0x150   : > { %v1330_v0 = vmul.f32 %v1329_v60, %v2137_v18 }
 0x151   : > { %v943_v38 = vpop.permute.xlu0 %942  ;;  %1208 = vrot.lane.b32.xlu2 %v1206_v29, %s1927_s28  ;;  %v2421_v59 = vpop.permute.xlu1 %1000 }
 0x152   : > { %v944_v6 = vrot.slane %v943_v38, 7  ;;  %v1002_v45 = vrot.slane %v2421_v59, 7 }
 0x153   : > { %1323 = vrot.lane.b32.xlu1 %v1321_v30, %s1928_s30  ;;  %1293 = vrot.lane.b32.xlu0 %v1291_v34, %s1926_s27  ;;  %s1623_s30 = sld [smem:[#allocation3 + $0x53]]  ;;  %v1357_v30 = vmul.f32 %v1745_v17, %v1356_v20 }
 0x154   : > { %v945_v14 = vsel %vm474_vm8, %v944_v6, %v943_v38  ;;  %v2448_v33 = vpop.permute.xlu2 %1075  ;;  %v1003_v50 = vsel %vm463_vm7, %v1002_v45, %v2421_v59  ;;  %v1183_v45 = vrot.slane %v2444_v56, 1 }
 0x155   : > { %v947_v22 = vadd.f32 %v945_v14, %v938_v32 }
 0x159   : > { %v2417_v2 = vpop.permute.xlu0 %1115  ;;  %1160 = vrot.lane.b32.xlu2 %v1158_v28, %s1926_s27  ;;  %v1338_v10 = vstv %s1623_s30  ;;  %v952_v18 = vpop.permute.xlu1 %951 }
 0x15a   : > { %v953_v15 = vrot.slane %v952_v18, 7  ;;  %v1339_v19 = vmul.f32 %v1745_v17, %v1338_v10  ;;  %v575_v10 = vld [vmem:[#allocation9 + $0x1] ss:$8 sm:$0x3]  ;;  %v1117_v49 = vrot.slane %v2417_v2, 1 }
 0x15b   : > { %1275 = vrot.lane.b32.xlu1 %v1273_v46, %s1927_s28  ;;  %901 = vrot.lane.b32.xlu0 %v899_v35, %s1923_s9 }
 0x15c   : > { %v954_v23 = vsel %vm484_vm9, %v953_v15, %v952_v18  ;;  %v635_v41 = vpop.permute.xlu2 %634 }
 0x15d   : > { %v956_v27 = vadd.f32 %v954_v23, %v947_v22  ;;  %v636_v9 = vrot.slane %v635_v41, 1 }
 0x15f   : > { %v638_v52 = vsel %vm637_vm12, %v635_v41, %v636_v9 }
 0x160   : > { %v640_v17 = vmul.f32 %v638_v52, %v575_v10 }
 0x161   : > { %v1067_v7 = vpop.permute.xlu0 %1066  ;;  %1332 = vrot.lane.b32.xlu2 %v1330_v0, %s1924_s10  ;;  %s1544_s10 = sld [smem:[#allocation3 + $0x4]]  ;;  %v2451_v38 = vpop.permute.xlu1 %1124 }
 0x162   : > { %v1068_v8 = vrot.slane %v1067_v7, 7 }
 0x163   : > { %1284 = vrot.lane.b32.xlu1 %v1282_v1, %s1923_s9 }
 0x164   : > { %v1069_v47 = vsel %vm463_vm7, %v1068_v8, %v1067_v7 }
 0x165   : > { %v2438_v16 = vadd.f32 %v1069_v47, %v1062_v4 }
 0x167   : > { %v976_v36 = vstv %s1544_s10  ;;  %s257_s10 = scalar_lea.vmem [#allocation12], %s1539_s23  ;;  %s1858_s23 = scalar_lea.hbm %s2581_s4, 16 }
 0x168   : > { %v977_v48 = vmul.f32 %v2453_v39, %v976_v36 }
 0x169   : > { %v961_v24 = vpop.permute.xlu0 %960  ;;  %1341 = vrot.lane.b32.xlu2 %v1339_v19, %s1927_s28  ;;  %v1019_v53 = vpop.permute.xlu1 %1018  ;;  %s1545_s28 = sld [smem:[#allocation3 + $0x5]] }
 0x16a   : > { %v962_v51 = vrot.slane %v961_v24, 7  ;;  %v987_v28 = vadd.f32 %v985_v42, %v977_v48  ;;  %v1020_v57 = vrot.slane %v1019_v53, 7 }
 0x16b   : > { %1350 = vrot.lane.b32.xlu1 %v1348_v21, %s1923_s9  ;;  %v708_v21 = vld [vmem:[#allocation9 + $0x2] ss:$8 sm:$0x3] }
 0x16c   : > { %v963_v29 = vsel %vm494_vm10, %v962_v51, %v961_v24  ;;  %v996_v46 = vadd.f32 %v994_v26, %v987_v28  ;;  %v1021_v60 = vsel %vm484_vm9, %v1020_v57, %v1019_v53 }
 0x16d   : > { %v965_v31 = vadd.f32 %v963_v29, %v956_v27 }
 0x16e   : > { %v1005_v55 = vadd.f32 %v1003_v50, %v996_v46 }
 0x170   : > { %v1014_v58 = vadd.f32 %v1012_v12, %v1005_v55 }
 0x171   : > { %1359 = vrot.lane.b32.xlu2 %v1357_v30, %s1926_s27  ;;  %v500_v34 = vpop.permute.xlu0 %499  ;;  %s1594_s27 = sld [smem:[#allocation3 + $0x36]] }
 0x172   : > { %v1023_v62 = vadd.f32 %v1021_v60, %v1014_v58  ;;  %v501_v0 = vrot.slane %v500_v34, 1  ;;  %v1184_v58 = vsel %vm443_vm5, %v2444_v56, %v1183_v45  ;;  %v1308_v45 = vstv %s1595_s5 }
 0x173   : > { %967 = vrot.lane.b32.xlu1 %v965_v31, %s1923_s9  ;;  %s1932_s9 = smov 47   ;;  %v1077_v31 = vrot.slane %v2448_v33, 7 }
 0x174   : > { %v503_v4 = vsel %vm502_vm11, %v500_v34, %v501_v0 }
 0x175   : > { %v505_v47 = vmul.f32 %v503_v4, %v432_v3  ;;  %v1078_v41 = vsel %vm474_vm8, %v1077_v31, %v2448_v33  ;;  %v2490_v33 = vld [vmem:[#allocation2 + $0x4] sm:$0x7] }
 0x176   : > { %v1080_v46 = vadd.f32 %v1078_v41, %v2438_v16 }
 0x177   : > { %v1175_v26 = vstv %s1594_s27  ;;  %s1421_s27 = sshll.u32 %s1417_s25, 4  ;;  %s1422_s27 = int_to_ptr.hbm [resolvable:$true] %s1421_s27 }
 0x178   : > { %v1176_v57 = vmul.f32 %v2490_v33, %v1175_v26 }
 0x185   : > { %v701_v44 = vpop.permute.xlu0 %700 }
 0x186   : > { %v702_v5 = vrot.slane %v701_v44, 1 }
 0x188   : > { %v703_v14 = vsel %vm637_vm12, %v701_v44, %v702_v5 }
 0x189   : > { %v705_v23 = vmul.f32 %v703_v14, %v575_v10 }
 0x18b   : > { %v834_v35 = vpop.permute.xlu2 %833 }
 0x18c   : > { %v835_v15 = vrot.slane %v834_v35, 1 }
 0x18d   : > { %v2464_v54 = vpop.permute.xlu0 %1133 }
 0x18e   : > { %v836_v20 = vsel %vm770_vm13, %v834_v35, %v835_v15  ;;  %v1109_v35 = vstv %s1545_s28  ;;  %v1135_v9 = vrot.slane %v2464_v54, 7  ;;  %s1852_s28 = sshra.s32 %s1422_s27, 4  ;;  %s1853_s28 = int_to_ptr.hbm [resolvable:$true] %s1852_s28 }
 0x18f   : > { %v838_v34 = vmul.f32 %v836_v20, %v708_v21  ;;  %v1110_v60 = vmul.f32 %v2453_v39, %v1109_v35  ;;  %p1859_p9 = scmp.lt.s32.totalorder %s1853_s28, %s2581_s4 }
 0x190   : > { %v1136_v52 = vsel %vm463_vm7, %v1135_v9, %v2464_v54 }
 0x193   : > { %v2468_v11 = vpop.permute.xlu2 %1248 }
 0x195   : > { %v768_v37 = vpop.permute.xlu1 %767  ;;  %v1028_v40 = vpop.permute.xlu0 %1027 }
 0x196   : > { %v1029_v61 = vrot.slane %v1028_v40, 7  ;;  %v769_v32 = vrot.slane %v768_v37, 1 }
 0x198   : > { %v1030_v63 = vsel %vm494_vm10, %v1029_v61, %v1028_v40  ;;  %v771_v22 = vsel %vm770_vm13, %v768_v37, %v769_v32  ;;  %v1118_v40 = vsel %vm443_vm5, %v2417_v2, %v1117_v49  ;;  %v1126_v61 = vrot.slane %v2451_v38, 1 }
 0x199   : > { %v1032_v59 = vadd.f32 %v1030_v63, %v1023_v62  ;;  %v773_v29 = vmul.f32 %v771_v22, %v708_v21 }
 0x19a   : > { %v1127_v4 = vsel %vm453_vm6, %v2451_v38, %v1126_v61 }
 0x19b   : > { %1034 = vrot.lane.b32.xlu2 %v1032_v59, %s1932_s9  ;;  %v2474_v8 = vpop.permute.xlu2 %1142  ;;  %v1186_v59 = vadd.f32 %v1184_v58, %v1176_v57 }
 0x19c   : > { %v1144_v2 = vrot.slane %v2474_v8, 7 }
 0x19d   : > { %v568_v1 = vpop.permute.xlu1 %567  ;;  %v2472_v7 = vpop.permute.xlu0 %1199 }
 0x19e   : > { %v569_v6 = vrot.slane %v568_v1, 1  ;;  %v1201_v62 = vrot.slane %v2472_v7, 7 }
 0x1a0   : > { %v570_v18 = vsel %vm502_vm11, %v568_v1, %v569_v6  ;;  %v1120_v1 = vadd.f32 %v1118_v40, %v1110_v60  ;;  %v1202_v6 = vsel %vm463_vm7, %v1201_v62, %v2472_v7 }
 0x1a1   : > { %v572_v13 = vmul.f32 %v570_v18, %v432_v3 }
 0x1a2   : > { %v1129_v32 = vadd.f32 %v1127_v4, %v1120_v1 }
 0x1a3   : > { %v573_v19 = vadd.f32 %v572_v13, %v505_v47  ;;  %v2477_v36 = vpop.permute.xlu2 %1314  ;;  %v1145_v13 = vsel %vm474_vm8, %v1144_v2, %v2474_v8 }
 0x1a4   : > { %v1138_v38 = vadd.f32 %v1136_v52, %v1129_v32 }
 0x1a5   : > { %v641_v24 = vadd.f32 %v640_v17, %v573_v19  ;;  %v1191_v51 = vpop.permute.xlu1 %1190  ;;  %v1094_v27 = vpop.permute.xlu0 %1093 }
 0x1a6   : > { %v1095_v42 = vrot.slane %v1094_v27, 7  ;;  %v1192_v55 = vrot.slane %v1191_v51, 1 }
 0x1a7   : > { %v706_v30 = vadd.f32 %v705_v23, %v641_v24  ;;  %v1147_v23 = vadd.f32 %v1145_v13, %v1138_v38 }
 0x1a8   : > { %v1096_v50 = vsel %vm494_vm10, %v1095_v42, %v1094_v27  ;;  %v1193_v63 = vsel %vm453_vm6, %v1191_v51, %v1192_v55 }
 0x1a9   : > { %v774_v25 = vadd.f32 %v773_v29, %v706_v30  ;;  %v1195_v5 = vadd.f32 %v1193_v63, %v1186_v59 }
 0x1ab   : > { %v2479_v48 = vadd.f32 %v838_v34, %v774_v25  ;;  %v1209_v37 = vpop.permute.xlu2 %1208  ;;  %v1204_v14 = vadd.f32 %v1202_v6, %v1195_v5  ;;  %v1242_v34 = vstv %s1546_s12  ;;  %v1250_v25 = vrot.slane %v2468_v11, 1  ;;  %s1854_s12 = scalar_lea.hbm %s1853_s28, 8 }
 0x1ac   : > { %v1210_v3 = vrot.slane %v1209_v37, 7  ;;  %p1855_p1 = scmp.ne.s32.totalorder %s1853_s28, %s1854_s12  ;;  %p1860_p10 = scmp.lt.s32.totalorder %s1858_s23, %s1854_s12 }
 0x1ad   : > { %v1085_v43 = vpop.permute.xlu1 %1084  ;;  %v2483_v28 = vpop.permute.xlu0 %1266 }
 0x1ae   : > { %v1086_v44 = vrot.slane %v1085_v43, 7  ;;  %v1211_v18 = vsel %vm474_vm8, %v1210_v3, %v1209_v37  ;;  %v1268_v35 = vrot.slane %v2483_v28, 7  ;;  %p1856_p4 = pnand %p1855_p1, %p2032_p3  ;;  %p1861_p2 = por %p1860_p10, %p1859_p9 }
 0x1af   : > { %v1213_v21 = vadd.f32 %v1211_v18, %v1204_v14 }
 0x1b0   : > { %v1087_v53 = vsel %vm484_vm9, %v1086_v44, %v1085_v43  ;;  %v1243_v43 = vmul.f32 %v2453_v39, %v1242_v34  ;;  %v1251_v44 = vsel %vm443_vm5, %v2468_v11, %v1250_v25  ;;  %v1269_v11 = vsel %vm463_vm7, %v1268_v35, %v2483_v28  ;;  %v1108_v35 = vld [vmem:[#allocation9 + $0x5] ss:$8 sm:$0x3]  ;;  %p1857_p8 = pneg %p1856_p4 }
 0x1b1   : > { %v1089_v12 = vadd.f32 %v1087_v53, %v1080_v46  ;;  %v1316_v46 = vrot.slane %v2477_v36, 1 }
 0x1b2   : > { %p1862_p11 = pnand %p1861_p2, %p1857_p8 }
 0x1b3   : > { %v1098_v16 = vadd.f32 %v1096_v50, %v1089_v12  ;;  %v1161_v47 = vpop.permute.xlu2 %1160  ;;  %v1253_v50 = vadd.f32 %v1251_v44, %v1243_v43  ;;  %v1309_v12 = vmul.f32 %v2490_v33, %v1308_v45  ;;  %v1317_v39 = vsel %vm443_vm5, %v2477_v36, %v1316_v46 }
 0x1b4   : > { %v1162_v15 = vrot.slane %v1161_v47, 7 }
 0x1b5   : > { %v1258_v0 = vpop.permute.xlu1 %1257  ;;  %1100 = vrot.lane.b32.xlu0 %v1098_v16, %s1932_s9  ;;  %v1218_v56 = vpop.permute.xlu0 %1217  ;;  %v1319_v62 = vadd.f32 %v1317_v39, %v1309_v12  ;;  %v1241_v39 = vld [vmem:[#allocation9 + $0x6] ss:$8 sm:$0x3]  ;;  %s1419_s9 = sshll.u32 %s257_s10, 4  ;;  %s1420_s9 = int_to_ptr.vmem [resolvable:$true] %s1419_s9 }
 0x1b6   : > { %v1219_v10 = vrot.slane %v1218_v56, 7  ;;  %v1163_v51 = vsel %vm494_vm10, %v1162_v15, %v1161_v47  ;;  %v1259_v42 = vrot.slane %v1258_v0, 1 }
 0x1b8   : > { %v1220_v17 = vsel %vm484_vm9, %v1219_v10, %v1218_v56  ;;  %v1260_v49 = vsel %vm453_vm6, %v1258_v0, %v1259_v42 }
 0x1b9   : > { %v1222_v54 = vadd.f32 %v1220_v17, %v1213_v21  ;;  %v1262_v57 = vadd.f32 %v1260_v49, %v1253_v50 }
 0x1bb   : > { %v1333_v41 = vpop.permute.xlu2 %1332  ;;  %v1271_v63 = vadd.f32 %v1269_v11, %v1262_v57 }
 0x1bc   : > { %v1334_v37 = vrot.slane %v1333_v41, 7 }
 0x1bd   : > { %v1152_v19 = vpop.permute.xlu1 %1151  ;;  %v1227_v7 = vpop.permute.xlu0 %1226 }
 0x1be   : > { %v1153_v22 = vrot.slane %v1152_v19, 7  ;;  %v1228_v24 = vrot.slane %v1227_v7, 7  ;;  %v1335_v56 = vsel %vm463_vm7, %v1334_v37, %v1333_v41 }
 0x1c0   : > { %v1154_v20 = vsel %vm484_vm9, %v1153_v22, %v1152_v19  ;;  %v1229_v8 = vsel %vm494_vm10, %v1228_v24, %v1227_v7 }
 0x1c1   : > { %v1156_v27 = vadd.f32 %v1154_v20, %v1147_v23  ;;  %v1231_v29 = vadd.f32 %v1229_v8, %v1222_v54  ;;  %v841_v23 = vld [vmem:[#allocation9 + $0x3] ss:$8 sm:$0x3] }
 0x1c3   : > { %v1165_v30 = vadd.f32 %v1163_v51, %v1156_v27  ;;  %1233 = vrot.lane.b32.xlu2 %v1231_v29, %s1933_s21  ;;  %v1342_v60 = vpop.permute.xlu2 %1341  ;;  %v975_v29 = vld [vmem:[#allocation9 + $0x4] ss:$8 sm:$0x3] }
 0x1c4   : > { %v1343_v1 = vrot.slane %v1342_v60, 7 }
 0x1c5   : > { %v1324_v31 = vpop.permute.xlu1 %1323  ;;  %1167 = vrot.lane.b32.xlu1 %v1165_v30, %s1933_s21  ;;  %v1294_v58 = vpop.permute.xlu0 %1293 }
 0x1c6   : > { %v1325_v53 = vrot.slane %v1324_v31, 1  ;;  %v1295_v40 = vrot.slane %v1294_v58, 7  ;;  %v1344_v6 = vsel %vm474_vm8, %v1343_v1, %v1342_v60 }
 0x1c8   : > { %v1326_v16 = vsel %vm453_vm6, %v1324_v31, %v1325_v53  ;;  %v1296_v36 = vsel %vm494_vm10, %v1295_v40, %v1294_v58 }
 0x1c9   : > { %v1328_v33 = vadd.f32 %v1326_v16, %v1319_v62 }
 0x1cb   : > { %v1337_v4 = vadd.f32 %v1335_v56, %v1328_v33  ;;  %v1360_v2 = vpop.permute.xlu2 %1359  ;;  %v1375_v33 = vstv %s1638_s13 }
 0x1cc   : > { %v1361_v32 = vrot.slane %v1360_v2, 7 }
 0x1cd   : > { %v1276_v26 = vpop.permute.xlu1 %1275  ;;  %v1346_v18 = vadd.f32 %v1344_v6, %v1337_v4  ;;  %v902_v38 = vpop.permute.xlu0 %901 }
 0x1ce   : > { %v1277_v55 = vrot.slane %v1276_v26, 7  ;;  %v1362_v14 = vsel %vm494_vm10, %v1361_v32, %v1360_v2  ;;  %v903_v19 = vrot.slane %v902_v38, 1 }
 0x1d0   : > { %v1278_v61 = vsel %vm474_vm8, %v1277_v55, %v1276_v26  ;;  %v904_v24 = vsel %vm484_vm9, %v902_v38, %v903_v19 }
 0x1d1   : > { %v1280_v9 = vadd.f32 %v1278_v61, %v1271_v63  ;;  %v906_v8 = vmul.f32 %v904_v24, %v841_v23 }
 0x1d3   : > { %v907_v41 = vadd.f32 %v906_v8, %v2479_v48 }
 0x1d5   : > { %v1285_v0 = vpop.permute.xlu1 %1284 }
 0x1d6   : > { %v1286_v59 = vrot.slane %v1285_v0, 7 }
 0x1d8   : > { %v1287_v28 = vsel %vm484_vm9, %v1286_v59, %v1285_v0  ;;  %v1373_v0 = vstv %s356_s6 }
 0x1d9   : > { %v1289_v3 = vadd.f32 %v1287_v28, %v1280_v9 }
 0x1db   : > { %v1298_v5 = vadd.f32 %v1296_v36, %v1289_v3 }
 0x1dd   : > { %v1351_v10 = vpop.permute.xlu1 %1350  ;;  %1300 = vrot.lane.b32.xlu0 %v1298_v5, %s1934_s24 }
 0x1de   : > { %v1352_v52 = vrot.slane %v1351_v10, 7 }
 0x1e0   : > { %v1353_v47 = vsel %vm484_vm9, %v1352_v52, %v1351_v10 }
 0x1e1   : > { %v1355_v13 = vadd.f32 %v1353_v47, %v1346_v18 }
 0x1e3   : > { %v1364_v15 = vadd.f32 %v1362_v14, %v1355_v13  ;;  %v1396_v14 = vld [vmem:[%s2077_s29] sm:$0xff] }
 0x1e5   : > { %1366 = vrot.lane.b32.xlu1 %v1364_v15, %s1934_s24  ;;  %v968_v17 = vpop.permute.xlu1 %967 }
 0x1e6   : > { %v969_v22 = vrot.slane %v968_v17, 1 }
 0x1e8   : > { %v970_v20 = vsel %vm484_vm9, %v968_v17, %v969_v22 }
 0x1e9   : > { %v972_v34 = vmul.f32 %v970_v20, %v841_v23 }
 0x1eb   : > { %v973_v26 = vadd.f32 %v972_v34, %v907_v41 }
 0x1f5   : > { %v1035_v21 = vpop.permute.xlu2 %1034 }
 0x1f6   : > { %v1036_v54 = vrot.slane %v1035_v21, 1 }
 0x1f8   : > { %v1038_v30 = vsel %vm1037_vm14, %v1035_v21, %v1036_v54 }
 0x1f9   : > { %v1040_v42 = vmul.f32 %v1038_v30, %v975_v29 }
 0x1fb   : > { %v1041_v53 = vadd.f32 %v1040_v42, %v973_v26 }
 0x21d   : > { %v1234_v43 = vpop.permute.xlu2 %1233 }
 0x21e   : > { %v1235_v49 = vrot.slane %v1234_v43, 1 }
 0x220   : > { %v1236_v57 = vsel %vm1170_vm15, %v1234_v43, %v1235_v49 }
 0x221   : > { %v1238_v48 = vmul.f32 %v1236_v57, %v1108_v35 }
 0x227   : > { %v1101_v7 = vpop.permute.xlu0 %1100 }
 0x228   : > { %v1102_v27 = vrot.slane %v1101_v7, 1 }
 0x22a   : > { %v1103_v25 = vsel %vm1037_vm14, %v1101_v7, %v1102_v27 }
 0x22b   : > { %v1105_v45 = vmul.f32 %v1103_v25, %v975_v29 }
 0x22d   : > { %v1106_v12 = vadd.f32 %v1105_v45, %v1041_v53 }
 0x237   : > { %v1168_v51 = vpop.permute.xlu1 %1167 }
 0x238   : > { %v1169_v31 = vrot.slane %v1168_v51, 1 }
 0x23a   : > { %v1171_v44 = vsel %vm1170_vm15, %v1168_v51, %v1169_v31 }
 0x23b   : > { %v1173_v55 = vmul.f32 %v1171_v44, %v1108_v35 }
 0x23d   : > { %v1174_v58 = vadd.f32 %v1173_v55, %v1106_v12 }
 0x23f   : > { %v1239_v40 = vadd.f32 %v1238_v48, %v1174_v58 }
 0x24f   : > { %v1301_v46 = vpop.permute.xlu0 %1300 }
 0x250   : > { %v1302_v50 = vrot.slane %v1301_v46, 1 }
 0x252   : > { %v1304_v11 = vsel %vm1303_vm0, %v1301_v46, %v1302_v50 }
 0x253   : > { %v1306_v60 = vmul.f32 %v1304_v11, %v1241_v39 }
 0x255   : > { %v1307_v62 = vadd.f32 %v1306_v60, %v1239_v40 }
 0x257   : > { %v1367_v37 = vpop.permute.xlu1 %1366 }
 0x258   : > { %v1368_v16 = vrot.slane %v1367_v37, 1 }
 0x25a   : > { %v1369_v61 = vsel %vm1303_vm0, %v1367_v37, %v1368_v16 }
 0x25b   : > { %v1371_v63 = vmul.f32 %v1369_v61, %v1241_v39 }
 0x25d   : > { %v1372_v59 = vadd.f32 %v1371_v63, %v1307_v62 }
 0x25f   : > { %v1374_v9 = vmul.f32 %v1373_v0, %v1372_v59 }
 0x261   : > { %v1376_v56 = vadd.f32 %v1375_v33, %v1374_v9 }
 0x263   : > { %v1639_v36 = vmul.f32 -1.442695, %v1376_v56 }
 0x265   : > { %1740 = vpow2.f32 %v1639_v36 }
 0x26b   : > { %v1741_v1 = vpop.eup %1740 }
 0x26c   : > { %v1380_v28 = vadd.f32 1.0, %v1741_v1 }
 0x26e   : > { %1742 = vrcp.f32 %v1380_v28  ;;  %v1392_v5 = vand.u32 2147483648, %v1380_v28  ;;  %v1390_v10 = vand.u32 2147483647, %v1380_v28  ;;  %vm1386_vm3 = vweird.f32 %v1380_v28 }
 0x270   : > { %v1393_v32 = vor.u32 1.1754944e-38, %v1392_v5  ;;  %vm1391_vm5 = vcmp.eq.f32.partialorder %v1390_v10, 8.507059e+37 }
 0x274   : > { %v1743_v3 = vpop.eup %1742 }
 0x275   : > { %v1382_v4 = vmul.f32 %v1743_v3, %v1380_v28  ;;  %vm1387_vm2 = vweird.f32 %v1743_v3 }
 0x276   : > { %vm1388_vm4 = vmor %vm1386_vm3, %vm1387_vm2 }
 0x277   : > { %v1383_v2 = vsub.f32 1.0, %v1382_v4 }
 0x279   : > { %v1384_v6 = vmul.f32 %v1743_v3, %v1383_v2 }
 0x27b   : > { %v1385_v52 = vadd.f32 %v1743_v3, %v1384_v6 }
 0x27d   : > { %v1389_v18 = vsel %vm1388_vm4, %v1743_v3, %v1385_v52 }
 0x27e   : > { %v1394_v47 = vsel %vm1391_vm5, %v1393_v32, %v1389_v18 }
 0x27f   : > { %v1399_v13 = vperm.slane %v1394_v47, 1  ;;  %v1398_v15 = vperm.slane %v1394_v47, 0 }
 0x281   : > { %v1400_v38 = vrot.slane %v1399_v13, 4 }
 0x283   : > { %v1401_v17 = vsel %vm365_vm1, %v1398_v15, %v1400_v38 }
 0x284   : > { %v1403_v19 = vmul.f32 %v1401_v17, %v1396_v14 }
 0x286   : > { %1404 = vst [vmem:[%s257_s10] sm:$0xff] %v1403_v19 }
 0x287   : > { %1865 = shalt.err (!%p1862_p11)
}
 0x288   : > { %1661 = dma.vmem_to_hbm [thread:$0]  (%p2032_p3), %s1420_s9, 128, %s1422_s27, %s1406_s19  }
 0x289 PF: > { %s1433_s26 = sand.u32 1, %s1904_s15   ;;  %p2589_p12 = scmp.ge.s32.totalorder %s1916_s18, 2 }
 0x28a   : > { %s1434_s6 = scalar_lea.sflag [#allocation5], %s1433_s26 }
 0x28b   : > { %p1678_p13 = pnand %p2589_p12, %p1995_p6 }
 0x28d   : > { %p1679_p0 = pneg %p1678_p13 }
 0x28f   : > { %1899 = dma.done.wait (%p1679_p0), %s1434_s6, 128  }
 0x290   : > { %1901 = vsyncadd (%p1679_p0), %s1434_s6, 4294967168  ;;  %p20_p5 = scmp.ge.s32.totalorder %s2019_s11, 4   ;;  %s2590_s15 = smov %s1908_s16 }
 0x291   : > { %s2591_s16 = smov %s1912_s17  ;;  %s2592_s17 = smov %s2028_s14 }
 0x292   : > { %s2593_s18 = smov %s2019_s11  ;;  %22 = sbr.rel (!%p20_p5) target bundleno = 8 (0x8), region = 102 }
 0x297   :  { %1440 = vsyncpa [#allocation4], 1 }
 0x298   :  { %1442 = vsyncpa [#allocation4 + $0x1], 1 }
 0x299   :  { %1443 = vsyncpa [#allocation11], 1 }
 0x29a   :  { %1445 = vsyncpa [#allocation11 + $0x1], 1 }
 0x29b   :  { %1446 = vsyncpa [#allocation5], 1 }
 0x29c   :  { %1448 = vsyncpa [#allocation5 + $0x1], 1 }
 0x29d   :  { %1449 = vsyncpa [#allocation6], 1 }
 0x29e   :  { %1451 = vsyncpa [#allocation6 + $0x1], 1 }
 0x29f   :  { %1452 = vsyncpa [#allocation8], 1 }

</bundles_post_ra>
